<compile_context>
chip_gen: v6e
topology: v6e:2x2x1
jax: 0.10.0
libtpu: 0.0.40
codegen_flags: <defaults>
</compile_context>

<pallas_src>
import jax
import jax.numpy as jnp
from jax.experimental import pallas as pl
from jax.experimental.pallas import tpu as pltpu

# forward() feeds U_ (2 components: u, w) into self.net and reads F_[:, 0:2],
# so the network implied by the forward pass is state_dim=2, hidden[-1]=2.
STATE_DIM = 2
HIDDEN = (32, 128, 128, 32, 2)

LANE = 128          # TPU lane width; batch lives on lanes
MAX_TM = 8192       # tile cap: keeps activations well inside v7x's 64 MiB VMEM

# packed-bias slab layout (one (B_PAD, 1) f32 array, static slices in-kernel)
_B_START = []
_off = 0
for _h in HIDDEN:
    _B_START.append(_off)
    _off += _h
B_TOTAL = _off                            # 322
B_PAD = ((B_TOTAL + 7) // 8) * 8          # 328 (sublane-aligned)


def _bias(b_ref, layer):
    s = _B_START[layer]
    return b_ref[s:s + HIDDEN[layer], :]  # static, tile-aligned slice (free)


# ---------------------------------------------------------------------------
# Pallas kernels (feature-major: features on sublanes, batch on lanes)
# ---------------------------------------------------------------------------
def _gfn_kernel(d_ref, x_ref, w1_ref, w2_ref, w3_ref, w4_ref, w5_ref, b_ref,
                f_ref, loss_ref):
    """One batch tile: 5-layer ReLU MLP + PDE residual + accumulated loss."""
    x = x_ref[...]                                    # (8, TM) f32

    # Layer 1 (in_features=2): two VPU broadcast-FMAs, no MXU round trip.
    w1 = w1_ref[...]                                  # (32, 2) f32
    h = jnp.maximum(w1[:, 0:1] * x[0:1, :] + w1[:, 1:2] * x[1:2, :]
                    + _bias(b_ref, 0), 0.0)           # (32, TM)

    # Layers 2-4: bf16 MXU inputs, f32 accumulation; bias/ReLU in f32
    # (v5e has no bf16 VPU, so f32 elementwise is the safe-everywhere choice).
    h = jnp.maximum(jnp.dot(w2_ref[...], h.astype(jnp.bfloat16),
                            preferred_element_type=jnp.float32)
                    + _bias(b_ref, 1), 0.0)           # (128, TM)
    h = jnp.maximum(jnp.dot(w3_ref[...], h.astype(jnp.bfloat16),
                            preferred_element_type=jnp.float32)
                    + _bias(b_ref, 2), 0.0)           # (128, TM)
    h = jnp.maximum(jnp.dot(w4_ref[...], h.astype(jnp.bfloat16),
                            preferred_element_type=jnp.float32)
                    + _bias(b_ref, 3), 0.0)           # (32, TM)

    # Layer 5 (out=2); the 0.01 F-scale is folded into w5/b5 in the wrapper.
    f = jnp.dot(w5_ref[...], h.astype(jnp.bfloat16),
                preferred_element_type=jnp.float32) + _bias(b_ref, 4)  # (2, TM)
    f_ref[...] = f                                    # lane-dense F store

    # PDE residual; row 6 of x is the validity mask for the padded tail tile.
    r1 = x[2:3, :] - (d_ref[0] * x[4:5, :] + f[0:1, :])
    r2 = x[3:4, :] - (d_ref[1] * x[5:6, :] + f[1:2, :])
    partial = jnp.sum((r1 * r1 + r2 * r2) * x[6:7, :])

    @pl.when(pl.program_id(0) == 0)
    def _init():
        loss_ref[0, 0] = 0.0
    loss_ref[0, 0] += partial


def _gfn_residual_kernel(d_ref, x_ref, loss_ref):
    """para=True fast path: F == 0, residual/loss only (no net, no weight DMA)."""
    x = x_ref[...]
    r1 = x[2:3, :] - d_ref[0] * x[4:5, :]
    r2 = x[3:4, :] - d_ref[1] * x[5:6, :]
    partial = jnp.sum((r1 * r1 + r2 * r2) * x[6:7, :])

    @pl.when(pl.program_id(0) == 0)
    def _init():
        loss_ref[0, 0] = 0.0
    loss_ref[0, 0] += partial


# ---------------------------------------------------------------------------
# Wrapper
# ---------------------------------------------------------------------------
def gfn_equation_forward(u, u_t, w_t, lap_u, lap_w, d1, d2, weights, biases,
                         para=False, tm=None):
    """Pallas implementation of GFNEquation.forward's compute (F_ and loss_eq).

    weights[i] are torch-layout (out_features, in_features); biases[i] are
    (out_features,).  Returns (F_ as (N, 2), loss_eq scalar).
    """
    n = u.shape[0]

    # Tile choice: one grid step for small N (per-step overhead ~0.35 us would
    # dominate); big, lane-multiple tiles otherwise, capped for v7x's VMEM.
    if tm is None:
        tm = min(pl.cdiv(n, LANE) * LANE, MAX_TM)
    tm = max(LANE, (tm // LANE) * LANE)
    ntiles = pl.cdiv(n, tm)
    n_pad = ntiles * tm

    # ONE feature-major batch stream: rows = u, w, u_t, w_t, lap_u, lap_w,
    # mask (1 for valid points, 0 for tail padding), zero pad row.
    ones = jnp.ones((1, n), jnp.float32)
    zeros = jnp.zeros((1, n), jnp.float32)
    x_fm = jnp.concatenate(
        [u.astype(jnp.float32).T, u_t.T, w_t.T, lap_u.T, lap_w.T, ones, zeros],
        axis=0).astype(jnp.float32)                       # (8, n)
    if n_pad != n:
        x_fm = jnp.pad(x_fm, ((0, 0), (0, n_pad - n)))    # masked tail tile

    d = jnp.array([d1, d2], jnp.float32)                  # SMEM scalars

    smem = pltpu.MemorySpace.SMEM
    d_spec = pl.BlockSpec(memory_space=smem)
    x_spec = pl.BlockSpec((8, tm), lambda i: (0, i))
    loss_spec = pl.BlockSpec((1, 1), lambda i: (0, 0), memory_space=smem)
    cparams = pltpu.CompilerParams(
        # loss accumulates across the grid axis -> "arbitrary" (sequential).
        dimension_semantics=("arbitrary",),
        vmem_limit_bytes=48 * 1024 * 1024,   # > all scoped defaults, < v7x phys
    )

    if para:
        # F_ = net(U_) * 0.0 == zeros; skip the MLP and its weight DMA entirely.
        loss = pl.pallas_call(
            _gfn_residual_kernel,
            out_shape=jax.ShapeDtypeStruct((1, 1), jnp.float32),
            grid=(ntiles,),
            in_specs=[d_spec, x_spec],
            out_specs=loss_spec,
            compiler_params=cparams,
        )(d, x_fm)
        return jnp.zeros((n, HIDDEN[-1]), jnp.float32), loss[0, 0] / n

    # Parameter prep: f32 for the tiny first layer, bf16 for the MXU layers,
    # the 0.01 output scale folded into the last layer, biases packed into one
    # (B_PAD, 1) f32 slab.  Constant index_maps keep them VMEM-resident.
    scale = jnp.float32(0.01)
    w1 = weights[0].astype(jnp.float32)                   # (32, 2)
    w2 = weights[1].astype(jnp.bfloat16)                  # (128, 32)
    w3 = weights[2].astype(jnp.bfloat16)                  # (128, 128)
    w4 = weights[3].astype(jnp.bfloat16)                  # (32, 128)
    w5 = (weights[4] * scale).astype(jnp.bfloat16)        # (2, 32)
    b_all = jnp.concatenate(
        [biases[0], biases[1], biases[2], biases[3], biases[4] * scale],
        axis=0).astype(jnp.float32)
    b_all = jnp.pad(b_all, (0, B_PAD - B_TOTAL)).reshape(B_PAD, 1)

    const = lambda a: pl.BlockSpec(a.shape, lambda i: (0, 0))
    f_spec = pl.BlockSpec((2, tm), lambda i: (0, i))

    f_fm, loss = pl.pallas_call(
        _gfn_kernel,
        out_shape=(jax.ShapeDtypeStruct((2, n_pad), jnp.float32),
                   jax.ShapeDtypeStruct((1, 1), jnp.float32)),
        grid=(ntiles,),
        in_specs=[d_spec, x_spec,
                  const(w1), const(w2), const(w3), const(w4), const(w5),
                  const(b_all)],
        out_specs=(f_spec, loss_spec),
        compiler_params=cparams,
    )(d, x_fm, w1, w2, w3, w4, w5, b_all)

    # Back to the module's (N, 2) layout for the caller (F is lane-dense inside).
    f = f_fm[:, :n].T
    return f, loss[0, 0] / n


# ---------------------------------------------------------------------------
# Glue: deterministic parameter init, solution_net and its derivatives
# ---------------------------------------------------------------------------
def init_net_params(seed=20230914):
    """Xavier-normal weights (torch layout (out, in)).  The torch module
    zero-inits biases; small nonzero biases are used here so the packed-bias
    path is actually exercised by the check."""
    key = jax.random.PRNGKey(seed)
    dims = (STATE_DIM,) + HIDDEN
    ws, bs = [], []
    for i in range(len(HIDDEN)):
        key, kw, kb = jax.random.split(key, 3)
        fan_in, fan_out = dims[i], dims[i + 1]
        std = (2.0 / (fan_in + fan_out)) ** 0.5
        ws.append(std * jax.random.normal(kw, (fan_out, fan_in), jnp.float32))
        bs.append(0.01 * jax.random.normal(kb, (fan_out,), jnp.float32))
    return ws, bs


def make_solution_net(seed=7):
    """Small smooth surrogate for solution_net: R^3 (t,x,y) -> R^2 (u,w)."""
    key = jax.random.PRNGKey(seed)
    k1, k2 = jax.random.split(key)
    wa = 0.5 * jax.random.normal(k1, (3, 16), jnp.float32)
    ba = jnp.zeros((16,), jnp.float32)
    wb = 0.5 * jax.random.normal(k2, (16, 2), jnp.float32)
    bb = jnp.zeros((2,), jnp.float32)

    def sol_single(p):                       # p: (3,)
        h = jnp.tanh(p @ wa + ba)
        return jnp.tanh(h @ wb + bb)         # (2,)

    return sol_single


def solution_and_derivatives(sol_single, position):
    # TODO(synk): dde.grad.jacobian / dde.grad.hessian are autodiff operations
    # with no direct Pallas equivalent; they are evaluated here with JAX autodiff.
    U = jax.vmap(sol_single)(position)                       # (N, 2)
    J = jax.vmap(jax.jacfwd(sol_single))(position)            # (N, 2, 3)
    H = jax.vmap(jax.hessian(sol_single))(position)           # (N, 2, 3, 3)
    u_t = J[:, 0, 0:1]                                        # (N, 1)
    w_t = J[:, 1, 0:1]                                        # (N, 1)
    lap_u = (H[:, 0, 1, 1] + H[:, 0, 2, 2])[:, None]          # (N, 1)
    lap_w = (H[:, 1, 1, 1] + H[:, 1, 2, 2])[:, None]          # (N, 1)
    return U, u_t, w_t, lap_u, lap_w


def reference_forward(u, u_t, w_t, lap_u, lap_w, d1, d2, ws, bs, para=False):
    """Pure-JAX reference using the same numeric formulation as the kernel."""
    scale = jnp.float32(0.0 if para else 0.01)
    x = u.astype(jnp.float32)
    h = jnp.maximum(x[:, 0:1] * ws[0][:, 0] + x[:, 1:2] * ws[0][:, 1] + bs[0], 0.0)
    for i in (1, 2, 3):
        h = jnp.maximum(
            jnp.dot(h.astype(jnp.bfloat16), ws[i].T.astype(jnp.bfloat16),
                    preferred_element_type=jnp.float32) + bs[i], 0.0)
    f = jnp.dot(h.astype(jnp.bfloat16), (ws[4] * scale).T.astype(jnp.bfloat16),
                preferred_element_type=jnp.float32) + bs[4] * scale
    r1 = u_t - (d1 * lap_u + f[:, 0:1])
    r2 = w_t - (d2 * lap_w + f[:, 1:2])
    return f, jnp.mean(r1 ** 2) + jnp.mean(r2 ** 2)


if __name__ == "__main__":
    # module parameters (__init__ sets D_1 = D_2 = 0.0; nonzero learnable
    # values here so the D * laplacian path is actually exercised)
    d1, d2 = 0.25, 0.5
    weights, biases = init_net_params(seed=20230914)
    sol_single = make_solution_net()

    def run_case(n, tm):
        key = jax.random.fold_in(jax.random.PRNGKey(0), n)
        position = jax.random.uniform(key, (n, 3), jnp.float32, -1.0, 1.0)
        U, u_t, w_t, lap_u, lap_w = solution_and_derivatives(sol_single, position)

        # Pallas hot path: self.net(U_) * 0.01, PDE residuals, MSE losses.
        f_k, loss_k = gfn_equation_forward(
            U, u_t, w_t, lap_u, lap_w, d1, d2, weights, biases, para=False, tm=tm)
        jax.block_until_ready((f_k, loss_k))
        f_r, loss_r = reference_forward(
            U, u_t, w_t, lap_u, lap_w, d1, d2, weights, biases, para=False)
        assert f_k.shape == (n, HIDDEN[-1])
        assert jnp.allclose(f_k, f_r, rtol=1e-4, atol=1e-6), "F mismatch"
        assert jnp.allclose(loss_k, loss_r, rtol=1e-4, atol=1e-6), "loss mismatch"

        # para=True short-circuit path.
        f_p, loss_p = gfn_equation_forward(
            U, u_t, w_t, lap_u, lap_w, d1, d2, weights, biases, para=True, tm=tm)
        jax.block_until_ready((f_p, loss_p))
        f_pr, loss_pr = reference_forward(
            U, u_t, w_t, lap_u, lap_w, d1, d2, weights, biases, para=True)
        assert jnp.allclose(f_p, f_pr, atol=1e-7)
        assert jnp.allclose(loss_p, loss_pr, rtol=1e-4, atol=1e-6)

    # N = 512 collocation points -> single lane-dense grid step (tm auto = 512).
    run_case(512, None)
    # Non-divisible N with an explicit smaller tile -> 3 grid steps: exercises
    # the masked tail tile and the resident SMEM loss accumulator.
    run_case(576, 256)

    print("KERNEL_OK")
</pallas_src>

<mosaic_0001>
module attributes {stable_mosaic.version = 11 : i64} {
  func.func @_gfn_kernel(%arg0: i32, %arg1: memref<2xf32, #tpu.memory_space<smem>>, %arg2: memref<8x512xf32, #tpu.memory_space<vmem>>, %arg3: memref<32x2xf32, #tpu.memory_space<vmem>>, %arg4: memref<128x32xbf16, #tpu.memory_space<vmem>>, %arg5: memref<128x128xbf16, #tpu.memory_space<vmem>>, %arg6: memref<32x128xbf16, #tpu.memory_space<vmem>>, %arg7: memref<2x32xbf16, #tpu.memory_space<vmem>>, %arg8: memref<328x1xf32, #tpu.memory_space<vmem>>, %arg9: memref<2x512xf32, #tpu.memory_space<vmem>>, %arg10: memref<1x1xf32, #tpu.memory_space<smem>>) attributes {dimension_semantics = [#tpu.dimension_semantics<arbitrary>], iteration_bounds = array<i64: 1>, scalar_prefetch = 0 : i64, scratch_operands = 0 : i64, tpu.core_type = #tpu.core_type<tc>, window_params = [{transform_indices = @transform_0, window_bounds = array<i64: 2>}, {transform_indices = @transform_1, window_bounds = array<i64: 8, 512>}, {pipeline_mode = #tpu.pipeline_mode<synchronous>, transform_indices = @transform_2, window_bounds = array<i64: 32, 2>}, {pipeline_mode = #tpu.pipeline_mode<synchronous>, transform_indices = @transform_3, window_bounds = array<i64: 128, 32>}, {pipeline_mode = #tpu.pipeline_mode<synchronous>, transform_indices = @transform_4, window_bounds = array<i64: 128, 128>}, {pipeline_mode = #tpu.pipeline_mode<synchronous>, transform_indices = @transform_5, window_bounds = array<i64: 32, 128>}, {pipeline_mode = #tpu.pipeline_mode<synchronous>, transform_indices = @transform_6, window_bounds = array<i64: 2, 32>}, {pipeline_mode = #tpu.pipeline_mode<synchronous>, transform_indices = @transform_7, window_bounds = array<i64: 328, 1>}, {transform_indices = @transform_8, window_bounds = array<i64: 2, 512>}, {transform_indices = @transform_9, window_bounds = array<i64: 1, 1>}]} {
    %c0 = arith.constant 0 : index
    %c0_0 = arith.constant 0 : index
    %0 = vector.load %arg2[%c0, %c0_0] : memref<8x512xf32, #tpu.memory_space<vmem>>, vector<8x512xf32>
    %c0_1 = arith.constant 0 : index
    %c0_2 = arith.constant 0 : index
    %1 = vector.load %arg3[%c0_1, %c0_2] : memref<32x2xf32, #tpu.memory_space<vmem>>, vector<32x2xf32>
    %2 = vector.extract_strided_slice %1 {offsets = [0, 0], sizes = [32, 1], strides = [1, 1]} : vector<32x2xf32> to vector<32x1xf32>
    %3 = vector.extract_strided_slice %0 {offsets = [0, 0], sizes = [1, 512], strides = [1, 1]} : vector<8x512xf32> to vector<1x512xf32>
    %4 = vector.broadcast %2 : vector<32x1xf32> to vector<32x512xf32>
    %5 = vector.broadcast %3 : vector<1x512xf32> to vector<32x512xf32>
    %6 = arith.mulf %4, %5 : vector<32x512xf32>
    %7 = vector.extract_strided_slice %1 {offsets = [0, 1], sizes = [32, 1], strides = [1, 1]} : vector<32x2xf32> to vector<32x1xf32>
    %8 = vector.extract_strided_slice %0 {offsets = [1, 0], sizes = [1, 512], strides = [1, 1]} : vector<8x512xf32> to vector<1x512xf32>
    %9 = vector.broadcast %7 : vector<32x1xf32> to vector<32x512xf32>
    %10 = vector.broadcast %8 : vector<1x512xf32> to vector<32x512xf32>
    %11 = arith.mulf %9, %10 : vector<32x512xf32>
    %12 = arith.addf %6, %11 : vector<32x512xf32>
    %c0_3 = arith.constant 0 : index
    %c0_4 = arith.constant 0 : index
    %13 = vector.load %arg8[%c0_3, %c0_4] : memref<328x1xf32, #tpu.memory_space<vmem>>, vector<32x1xf32>
    %14 = vector.broadcast %13 : vector<32x1xf32> to vector<32x512xf32>
    %15 = arith.addf %12, %14 : vector<32x512xf32>
    %cst = arith.constant 0.000000e+00 : f32
    %16 = vector.broadcast %cst : f32 to vector<32x512xf32>
    %17 = arith.maximumf %15, %16 : vector<32x512xf32>
    %c0_5 = arith.constant 0 : index
    %c0_6 = arith.constant 0 : index
    %18 = vector.load %arg4[%c0_5, %c0_6] : memref<128x32xbf16, #tpu.memory_space<vmem>>, vector<128x32xbf16>
    %19 = arith.truncf %17 : vector<32x512xf32> to vector<32x512xbf16>
    %cst_7 = arith.constant dense<0.000000e+00> : vector<128x512xf32>
    %20 = tpu.matmul %18, %19, %cst_7 {dimension_numbers = #tpu.dot_dimension_numbers<[1], [0], [0], [1], [0, 0, 1, 1], [], []>} : vector<128x32xbf16>, vector<32x512xbf16>, vector<128x512xf32> -> vector<128x512xf32>
    %c32 = arith.constant 32 : index
    %c0_8 = arith.constant 0 : index
    %21 = vector.load %arg8[%c32, %c0_8] : memref<328x1xf32, #tpu.memory_space<vmem>>, vector<128x1xf32>
    %22 = vector.broadcast %21 : vector<128x1xf32> to vector<128x512xf32>
    %23 = arith.addf %20, %22 : vector<128x512xf32>
    %cst_9 = arith.constant 0.000000e+00 : f32
    %24 = vector.broadcast %cst_9 : f32 to vector<128x512xf32>
    %25 = arith.maximumf %23, %24 : vector<128x512xf32>
    %c0_10 = arith.constant 0 : index
    %c0_11 = arith.constant 0 : index
    %26 = vector.load %arg5[%c0_10, %c0_11] : memref<128x128xbf16, #tpu.memory_space<vmem>>, vector<128x128xbf16>
    %27 = arith.truncf %25 : vector<128x512xf32> to vector<128x512xbf16>
    %cst_12 = arith.constant dense<0.000000e+00> : vector<128x512xf32>
    %28 = tpu.matmul %26, %27, %cst_12 {dimension_numbers = #tpu.dot_dimension_numbers<[1], [0], [0], [1], [0, 0, 1, 1], [], []>} : vector<128x128xbf16>, vector<128x512xbf16>, vector<128x512xf32> -> vector<128x512xf32>
    %c160 = arith.constant 160 : index
    %c0_13 = arith.constant 0 : index
    %29 = vector.load %arg8[%c160, %c0_13] : memref<328x1xf32, #tpu.memory_space<vmem>>, vector<128x1xf32>
    %30 = vector.broadcast %29 : vector<128x1xf32> to vector<128x512xf32>
    %31 = arith.addf %28, %30 : vector<128x512xf32>
    %cst_14 = arith.constant 0.000000e+00 : f32
    %32 = vector.broadcast %cst_14 : f32 to vector<128x512xf32>
    %33 = arith.maximumf %31, %32 : vector<128x512xf32>
    %c0_15 = arith.constant 0 : index
    %c0_16 = arith.constant 0 : index
    %34 = vector.load %arg6[%c0_15, %c0_16] : memref<32x128xbf16, #tpu.memory_space<vmem>>, vector<32x128xbf16>
    %35 = arith.truncf %33 : vector<128x512xf32> to vector<128x512xbf16>
    %cst_17 = arith.constant dense<0.000000e+00> : vector<32x512xf32>
    %36 = tpu.matmul %34, %35, %cst_17 {dimension_numbers = #tpu.dot_dimension_numbers<[1], [0], [0], [1], [0, 0, 1, 1], [], []>} : vector<32x128xbf16>, vector<128x512xbf16>, vector<32x512xf32> -> vector<32x512xf32>
    %c288 = arith.constant 288 : index
    %c0_18 = arith.constant 0 : index
    %37 = vector.load %arg8[%c288, %c0_18] : memref<328x1xf32, #tpu.memory_space<vmem>>, vector<32x1xf32>
    %38 = vector.broadcast %37 : vector<32x1xf32> to vector<32x512xf32>
    %39 = arith.addf %36, %38 : vector<32x512xf32>
    %cst_19 = arith.constant 0.000000e+00 : f32
    %40 = vector.broadcast %cst_19 : f32 to vector<32x512xf32>
    %41 = arith.maximumf %39, %40 : vector<32x512xf32>
    %c0_20 = arith.constant 0 : index
    %c0_21 = arith.constant 0 : index
    %42 = vector.load %arg7[%c0_20, %c0_21] : memref<2x32xbf16, #tpu.memory_space<vmem>>, vector<2x32xbf16>
    %43 = arith.truncf %41 : vector<32x512xf32> to vector<32x512xbf16>
    %cst_22 = arith.constant dense<0.000000e+00> : vector<2x512xf32>
    %44 = tpu.matmul %42, %43, %cst_22 {dimension_numbers = #tpu.dot_dimension_numbers<[1], [0], [0], [1], [0, 0, 1, 1], [], []>} : vector<2x32xbf16>, vector<32x512xbf16>, vector<2x512xf32> -> vector<2x512xf32>
    %c320 = arith.constant 320 : index
    %c0_23 = arith.constant 0 : index
    %45 = vector.load %arg8[%c320, %c0_23] : memref<328x1xf32, #tpu.memory_space<vmem>>, vector<2x1xf32>
    %46 = vector.broadcast %45 : vector<2x1xf32> to vector<2x512xf32>
    %47 = arith.addf %44, %46 : vector<2x512xf32>
    %c0_24 = arith.constant 0 : index
    %c0_25 = arith.constant 0 : index
    %48 = vector.load %arg9[%c0_24, %c0_25] : memref<2x512xf32, #tpu.memory_space<vmem>>, vector<2x512xf32>
    tpu.vector_store %arg9[%c0_24, %c0_25], %47 {strides = array<i32>} : memref<2x512xf32, #tpu.memory_space<vmem>>, vector<2x512xf32>,
    %49 = vector.extract_strided_slice %0 {offsets = [2, 0], sizes = [1, 512], strides = [1, 1]} : vector<8x512xf32> to vector<1x512xf32>
    %c0_26 = arith.constant 0 : index
    %50 = memref.load %arg1[%c0_26] : memref<2xf32, #tpu.memory_space<smem>>
    %51 = vector.extract_strided_slice %0 {offsets = [4, 0], sizes = [1, 512], strides = [1, 1]} : vector<8x512xf32> to vector<1x512xf32>
    %52 = vector.broadcast %50 : f32 to vector<1x512xf32>
    %53 = arith.mulf %52, %51 : vector<1x512xf32>
    %54 = vector.extract_strided_slice %47 {offsets = [0, 0], sizes = [1, 512], strides = [1, 1]} : vector<2x512xf32> to vector<1x512xf32>
    %55 = arith.addf %53, %54 : vector<1x512xf32>
    %56 = arith.subf %49, %55 : vector<1x512xf32>
    %57 = vector.extract_strided_slice %0 {offsets = [3, 0], sizes = [1, 512], strides = [1, 1]} : vector<8x512xf32> to vector<1x512xf32>
    %c1 = arith.constant 1 : index
    %58 = memref.load %arg1[%c1] : memref<2xf32, #tpu.memory_space<smem>>
    %59 = vector.extract_strided_slice %0 {offsets = [5, 0], sizes = [1, 512], strides = [1, 1]} : vector<8x512xf32> to vector<1x512xf32>
    %60 = vector.broadcast %58 : f32 to vector<1x512xf32>
    %61 = arith.mulf %60, %59 : vector<1x512xf32>
    %62 = vector.extract_strided_slice %47 {offsets = [1, 0], sizes = [1, 512], strides = [1, 1]} : vector<2x512xf32> to vector<1x512xf32>
    %63 = arith.addf %61, %62 : vector<1x512xf32>
    %64 = arith.subf %57, %63 : vector<1x512xf32>
    %65 = arith.mulf %56, %56 : vector<1x512xf32>
    %66 = arith.mulf %64, %64 : vector<1x512xf32>
    %67 = arith.addf %65, %66 : vector<1x512xf32>
    %68 = vector.extract_strided_slice %0 {offsets = [6, 0], sizes = [1, 512], strides = [1, 1]} : vector<8x512xf32> to vector<1x512xf32>
    %69 = arith.mulf %67, %68 : vector<1x512xf32>
    %70 = vector.shape_cast %69 : vector<1x512xf32> to vector<1x1x512xf32>
    %cst_27 = arith.constant dense<0.000000e+00> : vector<1xf32>
    %71 = vector.multi_reduction <add>, %70, %cst_27 [1, 2] : vector<1x1x512xf32> to vector<1xf32>
    %72 = vector.shape_cast %71 : vector<1xf32> to vector<1x1x1xf32>
    %73 = vector.extract %72[0, 0, 0] : f32 from vector<1x1x1xf32>
    %c0_i32 = arith.constant 0 : i32
    %74 = arith.cmpi eq, %arg0, %c0_i32 : i32
    %75 = arith.extui %74 : i1 to i32
    %c0_i32_28 = arith.constant 0 : i32
    %76 = arith.cmpi ne, %75, %c0_i32_28 : i32
    scf.if %76 {
      %cst_33 = arith.constant 0.000000e+00 : f32
      %c0_34 = arith.constant 0 : index
      %c0_35 = arith.constant 0 : index
      %80 = memref.load %arg10[%c0_34, %c0_35] : memref<1x1xf32, #tpu.memory_space<smem>>
      memref.store %cst_33, %arg10[%c0_34, %c0_35] : memref<1x1xf32, #tpu.memory_space<smem>>
    } else {
    }
    %c0_29 = arith.constant 0 : index
    %c0_30 = arith.constant 0 : index
    %77 = memref.load %arg10[%c0_29, %c0_30] : memref<1x1xf32, #tpu.memory_space<smem>>
    %78 = arith.addf %77, %73 : f32
    %c0_31 = arith.constant 0 : index
    %c0_32 = arith.constant 0 : index
    %79 = memref.load %arg10[%c0_31, %c0_32] : memref<1x1xf32, #tpu.memory_space<smem>>
    memref.store %78, %arg10[%c0_31, %c0_32] : memref<1x1xf32, #tpu.memory_space<smem>>
    return
  }
  func.func @transform_0(%arg0: i32) -> i32 {
    %c0_i32 = arith.constant 0 : i32
    %c0_i32_0 = arith.constant 0 : i32
    return %c0_i32 : i32
  }
  func.func @transform_1(%arg0: i32) -> (i32, i32) {
    %c0_i32 = arith.constant 0 : i32
    %c0_i32_0 = arith.constant 0 : i32
    return %c0_i32, %arg0 : i32, i32
  }
  func.func @transform_2(%arg0: i32) -> (i32, i32) {
    %c0_i32 = arith.constant 0 : i32
    %c0_i32_0 = arith.constant 0 : i32
    %c0_i32_1 = arith.constant 0 : i32
    return %c0_i32, %c0_i32_0 : i32, i32
  }
  func.func @transform_3(%arg0: i32) -> (i32, i32) {
    %c0_i32 = arith.constant 0 : i32
    %c0_i32_0 = arith.constant 0 : i32
    %c0_i32_1 = arith.constant 0 : i32
    return %c0_i32, %c0_i32_0 : i32, i32
  }
  func.func @transform_4(%arg0: i32) -> (i32, i32) {
    %c0_i32 = arith.constant 0 : i32
    %c0_i32_0 = arith.constant 0 : i32
    %c0_i32_1 = arith.constant 0 : i32
    return %c0_i32, %c0_i32_0 : i32, i32
  }
  func.func @transform_5(%arg0: i32) -> (i32, i32) {
    %c0_i32 = arith.constant 0 : i32
    %c0_i32_0 = arith.constant 0 : i32
    %c0_i32_1 = arith.constant 0 : i32
    return %c0_i32, %c0_i32_0 : i32, i32
  }
  func.func @transform_6(%arg0: i32) -> (i32, i32) {
    %c0_i32 = arith.constant 0 : i32
    %c0_i32_0 = arith.constant 0 : i32
    %c0_i32_1 = arith.constant 0 : i32
    return %c0_i32, %c0_i32_0 : i32, i32
  }
  func.func @transform_7(%arg0: i32) -> (i32, i32) {
    %c0_i32 = arith.constant 0 : i32
    %c0_i32_0 = arith.constant 0 : i32
    %c0_i32_1 = arith.constant 0 : i32
    return %c0_i32, %c0_i32_0 : i32, i32
  }
  func.func @transform_8(%arg0: i32) -> (i32, i32) {
    %c0_i32 = arith.constant 0 : i32
    %c0_i32_0 = arith.constant 0 : i32
    return %c0_i32, %arg0 : i32, i32
  }
  func.func @transform_9(%arg0: i32) -> (i32, i32) {
    %c0_i32 = arith.constant 0 : i32
    %c0_i32_0 = arith.constant 0 : i32
    %c0_i32_1 = arith.constant 0 : i32
    return %c0_i32, %c0_i32_0 : i32, i32
  }
}

</mosaic_0001>

<bundles_post_ra>
// kernel: tpu_custom_call.1
= control target key start
LH: loop header
LB: loop body
LE: loop exit
PB: predicated region body
PF: predicated region fallthrough
CT: control target
= control target key end

     0   :  { %15 = vsyncpa [#allocation5], 0  ;;  %s2545_s0 = inlined_call_operand.vmem [shape: f32[2], index: 0, kind: input, shape index: {}]   ;;  %s2546_s1 = inlined_call_operand.vmem [shape: f32[8,512], index: 1, kind: input, shape index: {}]   ;;  %s2547_s2 = inlined_call_operand.vmem [shape: f32[32,2], index: 2, kind: input, shape index: {}]   ;;  %s2548_s3 = inlined_call_operand.vmem [shape: bf16[128,32], index: 3, kind: input, shape index: {}]   ;;  %s2549_s4 = inlined_call_operand.vmem [shape: bf16[128,128], index: 4, kind: input, shape index: {}]   ;;  %s2550_s5 = inlined_call_operand.vmem [shape: bf16[32,128], index: 5, kind: input, shape index: {}]   ;;  %s2551_s6 = inlined_call_operand.vmem [shape: bf16[2,32], index: 6, kind: input, shape index: {}]   ;;  %s2552_s7 = inlined_call_operand.vmem [shape: f32[328,1], index: 7, kind: input, shape index: {}]   ;;  %s2553_s8 = inlined_call_operand.hbm [shape: f32[2,512], index: 8, kind: output, shape index: {0}]   ;;  %s2554_s9 = inlined_call_operand.hbm [shape: f32[1,1], index: 9, kind: output, shape index: {1}]  }
   0x1   :  { %16 = vsyncpa [#allocation3], 0 }
   0x2   :  { %17 = vsyncpa [#allocation4], 0  ;;  %s24_s11 = sshll.u32 %s2545_s0, 4  ;;  %s25_s11 = int_to_ptr.vmem [resolvable:$true] %s24_s11 }
   0x3   :  { %s1742_s12 = scalar_lea.vmem %s25_s11, 16  ;;  %p1747_p1 = scmp.lt.s32.totalorder %s25_s11, %s25_s11 }
   0x4   :  { %p1743_p0 = scmp.ne.s32.totalorder %s25_s11, %s1742_s12  ;;  %p1748_p2 = scmp.lt.s32.totalorder %s1742_s12, %s1742_s12 }
   0x6   :  { %p1749_p3 = por %p1748_p2, %p1747_p1 }
   0x8   :  { %p1750_p4 = pnand %p1749_p3, %p1743_p0 }
   0xa   :  { %1753 = shalt.err (!%p1750_p4)
}
   0xb   :  { %s1788_s13 = smov [#allocation2]  }
   0xc   :  { %27 = dma.vmem_to_smem %s25_s11, 16, %s1788_s13, [#allocation5]  }
   0xd   :  { %1782 = dma.done.wait [#allocation5], 16  }
   0xe   :  { %1783 = vsyncadd [#allocation5], 4294967280 }
   0xf   :  { %45 = sfence }
  0x10   :  { %v53_v0 = vld [vmem:[%s2547_s2 + $0x10] sm:$0xff]  ;;  %v51_v1 = vld [vmem:[%s2547_s2] sm:$0xff]  ;;  %v1789_v2 = vmov 1   ;;  %v54_v3 = vld [vmem:[%s2547_s2 + $0x18] sm:$0xff]  ;;  %v2555_v4 = vmov 0   ;;  %v75_v47 = vlaneseq  ;;  %vm387_vm0 = vcmask 261120  }
  0x11   :  { %1716 = vset.pattern.permute.xlu0 %v1789_v2  ;;  %1714 = vset.pattern.permute.xlu1 %v1789_v2  ;;  %v52_v5 = vld [vmem:[%s2547_s2 + $0x8] sm:$0xff]  ;;  %v174_v6 = vld [vmem:[%s2552_s7 + $0x18] sm:$0xff]  ;;  %v173_v7 = vld [vmem:[%s2552_s7 + $0x10] sm:$0xff]  ;;  %s1501_s28 = sld [smem:[#allocation2]]  ;;  %vm1613_vm1 = vcmask 1040384  }
  0x12   :  { %116 = vperm.xlu1 %1714, %v53_v0   ;;  %108 = vperm.xlu0 %1716, %v51_v1   ;;  %v265_v8 = vld [vmem:[%s2552_s7 + $0x90] sm:$0xff]  ;;  %v171_v9 = vld [vmem:[%s2552_s7] sm:$0xff]  ;;  %v172_v11 = vld [vmem:[%s2552_s7 + $0x8] sm:$0xff]  ;;  %v1987_v48 = vshrl.u32 %v75_v47, 7  ;;  %s1704_s29 = sld [smem:[#allocation2 + $0x1]] }
  0x13   :  { %444 = vmatprep.mubr.bf16.mxu0 %v2555_v4  ;;  %557 = vmatprep.mubr.bf16.mxu1 %v2555_v4  ;;  %v263_v10 = vld [vmem:[%s2552_s7 + $0x80] sm:$0xff]  ;;  %v261_v12 = vld [vmem:[%s2552_s7 + $0x70] sm:$0xff]  ;;  %v266_v13 = vld [vmem:[%s2552_s7 + $0x98] sm:$0xff] }
  0x14   :  { %v259_v14 = vld [vmem:[%s2552_s7 + $0x60] sm:$0xff]  ;;  %v264_v15 = vld [vmem:[%s2552_s7 + $0x88] sm:$0xff]  ;;  %v257_v16 = vld [vmem:[%s2552_s7 + $0x50] sm:$0xff]  ;;  %2563 = vst [vmem:[#allocation11_spill] sm:$0xff] %v1987_v48  ;;  %v125_v51 = vsub.s32 1, %v1987_v48  ;;  %v77_v56 = vsub.s32 0, %v1987_v48 }
  0x15   :  { %v262_v17 = vld [vmem:[%s2552_s7 + $0x78] sm:$0xff]  ;;  %v255_v18 = vld [vmem:[%s2552_s7 + $0x40] sm:$0xff]  ;;  %v260_v19 = vld [vmem:[%s2552_s7 + $0x68] sm:$0xff] }
  0x16   :  { %120 = vperm.xlu1 %1714, %v54_v3   ;;  %1717 = vset.pattern.permute.xlu0 %v2555_v4  ;;  %v253_v20 = vld [vmem:[%s2552_s7 + $0x30] sm:$0xff]  ;;  %v258_v21 = vld [vmem:[%s2552_s7 + $0x58] sm:$0xff]  ;;  %v251_v22 = vld [vmem:[%s2552_s7 + $0x20] sm:$0xff] }
  0x17   :  { %67 = vperm.xlu0 %1717, %v53_v0   ;;  %v256_v23 = vld [vmem:[%s2552_s7 + $0x48] sm:$0xff]  ;;  %v764_v24 = vld [vmem:[%s2552_s7 + $0x110] sm:$0xff]  ;;  %v254_v25 = vld [vmem:[%s2552_s7 + $0x38] sm:$0xff] }
  0x18   :  { %v762_v26 = vld [vmem:[%s2552_s7 + $0x100] sm:$0xff]  ;;  %v252_v27 = vld [vmem:[%s2552_s7 + $0x28] sm:$0xff]  ;;  %v760_v28 = vld [vmem:[%s2552_s7 + $0xf0] sm:$0xff] }
  0x19   :  { %v765_v29 = vld [vmem:[%s2552_s7 + $0x118] sm:$0xff]  ;;  %v758_v30 = vld [vmem:[%s2552_s7 + $0xe0] sm:$0xff]  ;;  %v763_v31 = vld [vmem:[%s2552_s7 + $0x108] sm:$0xff] }
  0x1a   :  { %1715 = vset.pattern.permute.xlu1 %v2555_v4  ;;  %v756_v32 = vld [vmem:[%s2552_s7 + $0xd0] sm:$0xff]  ;;  %v761_v33 = vld [vmem:[%s2552_s7 + $0xf8] sm:$0xff]  ;;  %v754_v34 = vld [vmem:[%s2552_s7 + $0xc0] sm:$0xff] }
  0x1b   :  { %62 = vperm.xlu1 %1715, %v52_v5   ;;  %72 = vperm.xlu0 %1717, %v54_v3   ;;  %v759_v35 = vld [vmem:[%s2552_s7 + $0xe8] sm:$0xff]  ;;  %v752_v36 = vld [vmem:[%s2552_s7 + $0xb0] sm:$0xff]  ;;  %v757_v37 = vld [vmem:[%s2552_s7 + $0xd8] sm:$0xff] }
  0x1c   :  { %v750_v38 = vld [vmem:[%s2552_s7 + $0xa0] sm:$0xff]  ;;  %v755_v39 = vld [vmem:[%s2552_s7 + $0xc8] sm:$0xff]  ;;  %v1222_v40 = vld [vmem:[%s2552_s7 + $0x130] sm:$0xff] }
  0x1d   :  { %v753_v41 = vld [vmem:[%s2552_s7 + $0xb8] sm:$0xff]  ;;  %v1220_v42 = vld [vmem:[%s2552_s7 + $0x120] sm:$0xff]  ;;  %v751_v43 = vld [vmem:[%s2552_s7 + $0xa8] sm:$0xff] }
  0x1e   :  { %v1387_v44 = vld [vmem:[%s2552_s7 + $0x140] sm:$0x3]  ;;  %v1223_v45 = vld [vmem:[%s2552_s7 + $0x138] sm:$0xff]  ;;  %v1221_v46 = vld [vmem:[%s2552_s7 + $0x128] sm:$0xff] }
  0x1f   :  { %1718 = vset.pattern.permute.xlu1 %v1789_v2  ;;  %57 = vperm.xlu0 %1717, %v51_v1   ;;  %v47_v52 = vld [vmem:[%s2546_s1] sm:$0xff]  ;;  %v48_v53 = vld [vmem:[%s2546_s1 + $0x8] sm:$0xff]  ;;  %v49_v54 = vld [vmem:[%s2546_s1 + $0x10] sm:$0xff] }
  0x20   :  { %112 = vperm.xlu1 %1718, %v52_v5   ;;  %v50_v55 = vld [vmem:[%s2546_s1 + $0x18] sm:$0xff]  ;;  %v126_v58 = vrot.slane %v47_v52, %v125_v51  ;;  %v130_v59 = vrot.slane %v48_v53, %v125_v51  ;;  %v134_v60 = vrot.slane %v49_v54, %v125_v51  ;;  %v78_v63 = vrot.slane %v47_v52, %v77_v56 }
  0x21   :  { %v138_v61 = vrot.slane %v50_v55, %v125_v51  ;;  %v82_v0 = vrot.slane %v48_v53, %v77_v56  ;;  %v86_v1 = vrot.slane %v49_v54, %v77_v56  ;;  %v90_v2 = vrot.slane %v50_v55, %v77_v56 }
  0x23   :  { %192 = vperm.xlu0 %1717, %v174_v6  }
  0x24   :  { %1719 = vset.pattern.permute.xlu1 %v2555_v4 }
  0x25   :  { %187 = vperm.xlu1 %1719, %v173_v7  }
  0x27   :  { %339 = vperm.xlu0 %1717, %v265_v8  }
  0x29   :  { %177 = vperm.xlu1 %1719, %v171_v9  }
  0x2b   :  { %329 = vperm.xlu0 %1717, %v263_v10  }
  0x2d   :  { %182 = vperm.xlu1 %1719, %v172_v11  }
  0x2f   :  { %319 = vperm.xlu0 %1717, %v261_v12  }
  0x31   :  { %344 = vperm.xlu1 %1719, %v266_v13  }
  0x33   :  { %309 = vperm.xlu0 %1717, %v259_v14  }
  0x35   :  { %334 = vperm.xlu1 %1719, %v264_v15  }
  0x37   :  { %299 = vperm.xlu0 %1717, %v257_v16  }
  0x39   :  { %324 = vperm.xlu1 %1719, %v262_v17  }
  0x3b   :  { %289 = vperm.xlu0 %1717, %v255_v18  }
  0x3d   :  { %314 = vperm.xlu1 %1719, %v260_v19  }
  0x3f   :  { %279 = vperm.xlu0 %1717, %v253_v20  }
  0x41   :  { %304 = vperm.xlu1 %1719, %v258_v21  }
  0x43   :  { %269 = vperm.xlu0 %1717, %v251_v22  }
  0x45   :  { %294 = vperm.xlu1 %1719, %v256_v23  }
  0x47   :  { %838 = vperm.xlu0 %1717, %v764_v24  }
  0x49   :  { %284 = vperm.xlu1 %1719, %v254_v25  }
  0x4b   :  { %828 = vperm.xlu0 %1717, %v762_v26  }
  0x4d   :  { %274 = vperm.xlu1 %1719, %v252_v27  }
  0x4f   :  { %818 = vperm.xlu0 %1717, %v760_v28  }
  0x51   :  { %843 = vperm.xlu1 %1719, %v765_v29  }
  0x53   :  { %808 = vperm.xlu0 %1717, %v758_v30  }
  0x55   :  { %833 = vperm.xlu1 %1719, %v763_v31  }
  0x57   :  { %798 = vperm.xlu0 %1717, %v756_v32  }
  0x59   :  { %823 = vperm.xlu1 %1719, %v761_v33  }
  0x5b   :  { %788 = vperm.xlu0 %1717, %v754_v34  }
  0x5d   :  { %813 = vperm.xlu1 %1719, %v759_v35  }
  0x5f   :  { %778 = vperm.xlu0 %1717, %v752_v36  }
  0x61   :  { %803 = vperm.xlu1 %1719, %v757_v37  }
  0x63   :  { %768 = vperm.xlu0 %1717, %v750_v38  }
  0x65   :  { %793 = vperm.xlu1 %1719, %v755_v39  }
  0x67   :  { %1236 = vperm.xlu0 %1717, %v1222_v40  }
  0x69   :  { %783 = vperm.xlu1 %1719, %v753_v41  }
  0x6b   :  { %1226 = vperm.xlu0 %1717, %v1220_v42  }
  0x6d   :  { %773 = vperm.xlu1 %1719, %v751_v43  }
  0x6f   :  { %1390 = vperm.xlu0 %1717, %v1387_v44  }
  0x71   :  { %1241 = vperm.xlu1 %1719, %v1223_v45  }
  0x75   :  { %1231 = vperm.xlu1 %1719, %v1221_v46  }
  0x8d   :  { %v117_v49 = vpop.permute.xlu1 %116  ;;  %v109_v50 = vpop.permute.xlu0 %108 }
  0x8e   :  { %v147_v3 = vmul.f32 %v126_v58, %v117_v49  ;;  %v148_v5 = vmul.f32 %v130_v59, %v117_v49  ;;  %v149_v6 = vmul.f32 %v134_v60, %v117_v49  ;;  %v150_v7 = vmul.f32 %v138_v61, %v117_v49 }
  0x8f   :  { %v139_v14 = vmul.f32 %v126_v58, %v109_v50  ;;  %v140_v15 = vmul.f32 %v130_v59, %v109_v50  ;;  %v141_v16 = vmul.f32 %v134_v60, %v109_v50  ;;  %v142_v17 = vmul.f32 %v138_v61, %v109_v50 }
  0x91   :  { %v121_v57 = vpop.permute.xlu1 %120 }
  0x92   :  { %v68_v62 = vpop.permute.xlu0 %67  ;;  %v151_v18 = vmul.f32 %v126_v58, %v121_v57  ;;  %v152_v19 = vmul.f32 %v130_v59, %v121_v57  ;;  %v153_v22 = vmul.f32 %v134_v60, %v121_v57  ;;  %v154_v23 = vmul.f32 %v138_v61, %v121_v57 }
  0x93   :  { %v99_v10 = vmul.f32 %v78_v63, %v68_v62  ;;  %v100_v11 = vmul.f32 %v82_v0, %v68_v62  ;;  %v101_v12 = vmul.f32 %v86_v1, %v68_v62  ;;  %v102_v13 = vmul.f32 %v90_v2, %v68_v62 }
  0x95   :  { %v164_v28 = vadd.f32 %v148_v5, %v100_v11  ;;  %v166_v29 = vadd.f32 %v150_v7, %v102_v13  ;;  %v163_v30 = vadd.f32 %v147_v3, %v99_v10  ;;  %v165_v31 = vadd.f32 %v149_v6, %v101_v12 }
  0x96   :  { %v63_v8 = vpop.permute.xlu1 %62  ;;  %v73_v9 = vpop.permute.xlu0 %72 }
  0x97   :  { %v104_v20 = vmul.f32 %v82_v0, %v73_v9  ;;  %v106_v21 = vmul.f32 %v90_v2, %v73_v9  ;;  %v103_v24 = vmul.f32 %v78_v63, %v73_v9  ;;  %v105_v25 = vmul.f32 %v86_v1, %v73_v9 }
  0x98   :  { %v95_v32 = vmul.f32 %v78_v63, %v63_v8  ;;  %v96_v33 = vmul.f32 %v82_v0, %v63_v8  ;;  %v97_v34 = vmul.f32 %v86_v1, %v63_v8  ;;  %v98_v35 = vmul.f32 %v90_v2, %v63_v8 }
  0x99   :  { %v168_v38 = vadd.f32 %v152_v19, %v104_v20  ;;  %v170_v39 = vadd.f32 %v154_v23, %v106_v21  ;;  %v167_v43 = vadd.f32 %v151_v18, %v103_v24  ;;  %v169_v44 = vadd.f32 %v153_v22, %v105_v25 }
  0x9a   :  { %v58_v26 = vpop.permute.xlu0 %57 }
  0x9b   :  { %v113_v27 = vpop.permute.xlu1 %112  ;;  %v91_v36 = vmul.f32 %v78_v63, %v58_v26  ;;  %v92_v37 = vmul.f32 %v82_v0, %v58_v26  ;;  %v93_v40 = vmul.f32 %v86_v1, %v58_v26  ;;  %v94_v41 = vmul.f32 %v90_v2, %v58_v26 }
  0x9c   :  { %v143_v45 = vmul.f32 %v126_v58, %v113_v27  ;;  %v144_v46 = vmul.f32 %v130_v59, %v113_v27  ;;  %v145_v50 = vmul.f32 %v134_v60, %v113_v27  ;;  %v146_v51 = vmul.f32 %v138_v61, %v113_v27 }
  0x9d   :  { %v155_v55 = vadd.f32 %v139_v14, %v91_v36  ;;  %v156_v56 = vadd.f32 %v140_v15, %v92_v37  ;;  %v157_v63 = vadd.f32 %v141_v16, %v93_v40  ;;  %v158_v0 = vadd.f32 %v142_v17, %v94_v41  ;;  %v1722_v40 = vld [vmem:[%s2548_s3 + $0x10] sm:$0xff]   ;;  %v1723_v41 = vld [vmem:[%s2548_s3 + $0x18] sm:$0xff]  }
  0x9e   :  { %v193_v42 = vpop.permute.xlu0 %192  ;;  %v159_v17 = vadd.f32 %v143_v45, %v95_v32  ;;  %v160_v18 = vadd.f32 %v144_v46, %v96_v33  ;;  %v161_v19 = vadd.f32 %v145_v50, %v97_v34  ;;  %v162_v20 = vadd.f32 %v146_v51, %v98_v35  ;;  %v1727_v45 = vld [vmem:[%s2548_s3 + $0x38] sm:$0xff]  }
  0x9f   :  { %v208_v47 = vadd.f32 %v193_v42, %v168_v38  ;;  %v210_v49 = vadd.f32 %v193_v42, %v170_v39  ;;  %v207_v53 = vadd.f32 %v193_v42, %v167_v43  ;;  %v209_v54 = vadd.f32 %v193_v42, %v169_v44  ;;  %v1720_v38 = vld [vmem:[%s2548_s3] sm:$0xff]   ;;  %v1721_v39 = vld [vmem:[%s2548_s3 + $0x8] sm:$0xff]   ;;  %v1726_v44 = vld [vmem:[%s2548_s3 + $0x30] sm:$0xff]  }
  0xa0   :  { %v188_v52 = vpop.permute.xlu1 %187  ;;  %v1724_v42 = vld [vmem:[%s2548_s3 + $0x20] sm:$0xff]   ;;  %v1725_v43 = vld [vmem:[%s2548_s3 + $0x28] sm:$0xff]  }
  0xa1   :  { %v204_v57 = vadd.f32 %v188_v52, %v164_v28  ;;  %v206_v62 = vadd.f32 %v188_v52, %v166_v29  ;;  %v203_v1 = vadd.f32 %v188_v52, %v163_v30  ;;  %v205_v2 = vadd.f32 %v188_v52, %v165_v31 }
  0xa2   :  { %v224_v5 = vmax.f32 %v208_v47, 0.0  ;;  %v226_v58 = vmax.f32 %v210_v49, 0.0  ;;  %v223_v8 = vmax.f32 %v207_v53, 0.0  ;;  %v225_v61 = vmax.f32 %v209_v54, 0.0  ;;  %v2059_v46 = vpop.permute.xlu0 %339 }
  0xa3   :  { %v220_v3 = vmax.f32 %v204_v57, 0.0  ;;  %v222_v6 = vmax.f32 %v206_v62, 0.0  ;;  %v219_v7 = vmax.f32 %v203_v1, 0.0  ;;  %v221_v60 = vmax.f32 %v205_v2, 0.0 }
  0xa4   :  { %v178_v59 = vpop.permute.xlu1 %177 }
  0xa5   :  { %v195_v9 = vadd.f32 %v178_v59, %v155_v55  ;;  %v196_v10 = vadd.f32 %v178_v59, %v156_v56  ;;  %v197_v11 = vadd.f32 %v178_v59, %v157_v63  ;;  %v198_v12 = vadd.f32 %v178_v59, %v158_v0 }
  0xa6   :  { %v248_v13 = vpack.c.bf16 %v224_v5, %v220_v3  ;;  %v250_v14 = vpack.c.bf16 %v226_v58, %v222_v6  ;;  %v247_v15 = vpack.c.bf16 %v223_v8, %v219_v7  ;;  %v249_v16 = vpack.c.bf16 %v225_v61, %v221_v60  ;;  %v2063_v49 = vpop.permute.xlu0 %329 }
  0xa7   :  { %v212_v26 = vmax.f32 %v196_v10, 0.0  ;;  %v214_v27 = vmax.f32 %v198_v12, 0.0  ;;  %v211_v28 = vmax.f32 %v195_v9, 0.0  ;;  %v213_v29 = vmax.f32 %v197_v11, 0.0 }
  0xa8   :  { %424 = vmatprep.subr.bf16.mxu0 %v248_v13  ;;  %537 = vmatprep.subr.bf16.mxu1 %v250_v14  ;;  %v183_v21 = vpop.permute.xlu1 %182 }
  0xa9   :  { %v199_v22 = vadd.f32 %v183_v21, %v159_v17  ;;  %v200_v23 = vadd.f32 %v183_v21, %v160_v18  ;;  %v201_v24 = vadd.f32 %v183_v21, %v161_v19  ;;  %v202_v25 = vadd.f32 %v183_v21, %v162_v20  ;;  %425 = vmatpush1.bf16.msra.mxu0 %v247_v15 }
  0xaa   :  { %538 = vmatpush1.bf16.msra.mxu1 %v249_v16  ;;  %v2067_v51 = vpop.permute.xlu0 %319 }
  0xab   :  { %v216_v30 = vmax.f32 %v200_v23, 0.0  ;;  %v218_v31 = vmax.f32 %v202_v25, 0.0  ;;  %v215_v36 = vmax.f32 %v199_v22, 0.0  ;;  %v217_v32 = vmax.f32 %v201_v24, 0.0 }
  0xac   :  { %v2061_v47 = vpop.permute.xlu1 %344 }
  0xad   :  { %v244_v33 = vpack.c.bf16 %v216_v30, %v212_v26  ;;  %v246_v34 = vpack.c.bf16 %v218_v31, %v214_v27  ;;  %v243_v35 = vpack.c.bf16 %v215_v36, %v211_v28  ;;  %v245_v37 = vpack.c.bf16 %v217_v32, %v213_v29 }
  0xae   :  { %v2071_v53 = vpop.permute.xlu0 %309 }
  0xaf   :  { %426 = vmatprep.subr.bf16.mxu0 %v244_v33  ;;  %539 = vmatprep.subr.bf16.mxu1 %v246_v34 }
  0xb0   :  { %427 = vmatpush1.bf16.msra.mxu0 %v243_v35  ;;  %540 = vmatpush1.bf16.msra.mxu1 %v245_v37  ;;  %v2065_v50 = vpop.permute.xlu1 %334 }
  0xb2   :  { %v2075_v55 = vpop.permute.xlu0 %299 }
  0xb3   :  { %1676 = vmatmul.mubr.msk.bf16.vlgmr.msra.gmra.mxu0 %vm387_vm0, %v1720_v38  ;;  %1684 = vmatmul.mubr.msk.bf16.vlgmr.msra.gmra.mxu1 %vm387_vm0, %v1720_v38 }
  0xb4   :  { %454 = vmatprep.mubr.bf16.mxu0 %v2555_v4  ;;  %567 = vmatprep.mubr.bf16.mxu1 %v2555_v4  ;;  %v2069_v52 = vpop.permute.xlu1 %324 }
  0xb6   :  { %v2079_v57 = vpop.permute.xlu0 %289 }
  0xb7   :  { %2564 = vst [vmem:[#allocation12_spill] sm:$0xff] %v2079_v57 }
  0xb8   :  { %v2073_v54 = vpop.permute.xlu1 %314 }
  0xba   :  { %v280_v63 = vpop.permute.xlu0 %279 }
  0xbb   :  { %1677 = vmatmul.mubr.msk.bf16.gmra.mxu0 %vm387_vm0, %v1721_v39  ;;  %1685 = vmatmul.mubr.msk.bf16.gmra.mxu1 %vm387_vm0, %v1721_v39 }
  0xbc   :  { %464 = vmatprep.mubr.bf16.mxu0 %v2555_v4  ;;  %577 = vmatprep.mubr.bf16.mxu1 %v2555_v4  ;;  %v2077_v56 = vpop.permute.xlu1 %304 }
  0xbe   :  { %v270_v3 = vpop.permute.xlu0 %269 }
  0xc0   :  { %v2081_v62 = vpop.permute.xlu1 %294 }
  0xc3   :  { %1678 = vmatmul.mubr.msk.bf16.gmra.mxu0 %vm387_vm0, %v1722_v40  ;;  %1686 = vmatmul.mubr.msk.bf16.gmra.mxu1 %vm387_vm0, %v1722_v40 }
  0xc4   :  { %474 = vmatprep.mubr.bf16.mxu0 %v2555_v4  ;;  %587 = vmatprep.mubr.bf16.mxu1 %v2555_v4  ;;  %v285_v0 = vpop.permute.xlu1 %284 }
  0xc8   :  { %v275_v7 = vpop.permute.xlu1 %274 }
  0xcb   :  { %1679 = vmatmul.mubr.msk.bf16.gmra.mxu0 %vm387_vm0, %v1723_v41  ;;  %1687 = vmatmul.mubr.msk.bf16.gmra.mxu1 %vm387_vm0, %v1723_v41 }
  0xcc   :  { %484 = vmatprep.mubr.bf16.mxu0 %v2555_v4  ;;  %597 = vmatprep.mubr.bf16.mxu1 %v2555_v4 }
  0xd3   :  { %1680 = vmatmul.mubr.msk.bf16.gmra.mxu0 %vm387_vm0, %v1724_v42  ;;  %1688 = vmatmul.mubr.msk.bf16.gmra.mxu1 %vm387_vm0, %v1724_v42 }
  0xd4   :  { %494 = vmatprep.mubr.bf16.mxu0 %v2555_v4  ;;  %607 = vmatprep.mubr.bf16.mxu1 %v2555_v4 }
  0xdb   :  { %1681 = vmatmul.mubr.msk.bf16.gmra.mxu0 %vm387_vm0, %v1725_v43  ;;  %1689 = vmatmul.mubr.msk.bf16.gmra.mxu1 %vm387_vm0, %v1725_v43 }
  0xdc   :  { %504 = vmatprep.mubr.bf16.mxu0 %v2555_v4  ;;  %617 = vmatprep.mubr.bf16.mxu1 %v2555_v4 }
  0xe3   :  { %1682 = vmatmul.mubr.msk.bf16.gmra.mxu0 %vm387_vm0, %v1726_v44  ;;  %1690 = vmatmul.mubr.msk.bf16.gmra.mxu1 %vm387_vm0, %v1726_v44 }
  0xe4   :  { %514 = vmatprep.mubr.bf16.mxu0 %v2555_v4  ;;  %627 = vmatprep.mubr.bf16.mxu1 %v2555_v4 }
  0xeb   :  { %1683 = vmatmul.mubr.msk.bf16.gmra.mxu0 %vm387_vm0, %v1727_v45  ;;  %1691 = vmatmul.mubr.msk.bf16.gmra.mxu1 %vm387_vm0, %v1727_v45 }
  0xec   :  { %926 = vmatprep.mubr.bf16.mxu0 %v2555_v4  ;;  %1039 = vmatprep.mubr.bf16.mxu1 %v2555_v4 }
 0x173   :  { %v446_v1 = vpop.f32.mrf.mxu0  ;;  %v559_v2 = vpop.f32.mrf.mxu1 }
 0x174   :  { %v447_v5 = vadd.f32 %v446_v1, %v270_v3  ;;  %v560_v6 = vadd.f32 %v559_v2, %v270_v3 }
 0x175   :  { %v448_v58 = vpop.f32.mrf.mxu0  ;;  %v561_v59 = vpop.f32.mrf.mxu1 }
 0x176   :  { %v449_v8 = vadd.f32 %v448_v58, %v270_v3  ;;  %v562_v60 = vadd.f32 %v561_v59, %v270_v3  ;;  %v638_v12 = vmax.f32 %v447_v5, 0.0  ;;  %v640_v13 = vmax.f32 %v560_v6, 0.0 }
 0x177   :  { %v450_v61 = vpop.f32.mrf.mxu0  ;;  %v563_v9 = vpop.f32.mrf.mxu1 }
 0x178   :  { %v451_v10 = vadd.f32 %v450_v61, %v275_v7  ;;  %v564_v11 = vadd.f32 %v563_v9, %v275_v7  ;;  %v639_v20 = vmax.f32 %v449_v8, 0.0  ;;  %v641_v21 = vmax.f32 %v562_v60, 0.0 }
 0x179   :  { %v452_v14 = vpop.f32.mrf.mxu0  ;;  %v565_v15 = vpop.f32.mrf.mxu1 }
 0x17a   :  { %v642_v16 = vmax.f32 %v451_v10, 0.0  ;;  %v644_v17 = vmax.f32 %v564_v11, 0.0  ;;  %v453_v18 = vadd.f32 %v452_v14, %v275_v7  ;;  %v566_v19 = vadd.f32 %v565_v15, %v275_v7 }
 0x17b   :  { %v456_v22 = vpop.f32.mrf.mxu0  ;;  %v569_v23 = vpop.f32.mrf.mxu1 }
 0x17c   :  { %v2083_v24 = vpack.c.bf16 %v642_v16, %v638_v12  ;;  %v2085_v25 = vpack.c.bf16 %v644_v17, %v640_v13  ;;  %v643_v26 = vmax.f32 %v453_v18, 0.0  ;;  %v645_v27 = vmax.f32 %v566_v19, 0.0 }
 0x17d   :  { %v457_v28 = vadd.f32 %v456_v22, %v280_v63  ;;  %v570_v29 = vadd.f32 %v569_v23, %v280_v63  ;;  %v458_v30 = vpop.f32.mrf.mxu0  ;;  %v571_v31 = vpop.f32.mrf.mxu1 }
 0x17e   :  { %2565 = vst [vmem:[#allocation13_spill] sm:$0xff] %v2083_v24  ;;  %2566 = vst [vmem:[#allocation14_spill] sm:$0xff] %v2085_v25  ;;  %v2087_v36 = vpack.c.bf16 %v643_v26, %v639_v20  ;;  %v2089_v32 = vpack.c.bf16 %v645_v27, %v641_v21  ;;  %v459_v33 = vadd.f32 %v458_v30, %v280_v63 }
 0x17f   :  { %v572_v34 = vadd.f32 %v571_v31, %v280_v63  ;;  %v460_v35 = vpop.f32.mrf.mxu0  ;;  %v573_v37 = vpop.f32.mrf.mxu1  ;;  %v646_v40 = vmax.f32 %v457_v28, 0.0  ;;  %v648_v41 = vmax.f32 %v570_v29, 0.0 }
 0x180   :  { %2567 = vst [vmem:[#allocation15_spill] sm:$0xff] %v2087_v36  ;;  %2568 = vst [vmem:[#allocation16_spill] sm:$0xff] %v2089_v32  ;;  %v461_v38 = vadd.f32 %v460_v35, %v285_v0  ;;  %v574_v39 = vadd.f32 %v573_v37, %v285_v0  ;;  %v647_v3 = vmax.f32 %v459_v33, 0.0 }
 0x181   :  { %v462_v42 = vpop.f32.mrf.mxu0  ;;  %v575_v43 = vpop.f32.mrf.mxu1  ;;  %v649_v5 = vmax.f32 %v572_v34, 0.0 }
 0x182   :  { %v650_v44 = vmax.f32 %v461_v38, 0.0  ;;  %v652_v45 = vmax.f32 %v574_v39, 0.0  ;;  %v463_v1 = vadd.f32 %v462_v42, %v285_v0  ;;  %v576_v2 = vadd.f32 %v575_v43, %v285_v0 }
 0x183   :  { %v2091_v6 = vpop.f32.mrf.mxu0  ;;  %v2093_v58 = vpop.f32.mrf.mxu1 }
 0x184   :  { %2569 = vst [vmem:[#allocation17_spill] sm:$0xff] %v2091_v6  ;;  %2570 = vst [vmem:[#allocation18_spill] sm:$0xff] %v2093_v58  ;;  %v2095_v59 = vpack.c.bf16 %v650_v44, %v646_v40  ;;  %v2097_v63 = vpack.c.bf16 %v652_v45, %v648_v41  ;;  %v651_v7 = vmax.f32 %v463_v1, 0.0  ;;  %v653_v8 = vmax.f32 %v576_v2, 0.0 }
 0x185   :  { %v468_v60 = vpop.f32.mrf.mxu0  ;;  %v581_v61 = vpop.f32.mrf.mxu1 }
 0x186   :  { %2571 = vst [vmem:[#allocation19_spill] sm:$0xff] %v2095_v59  ;;  %2572 = vst [vmem:[#allocation20_spill] sm:$0xff] %v2097_v63  ;;  %v2099_v9 = vpack.c.bf16 %v651_v7, %v647_v3  ;;  %v2101_v10 = vpack.c.bf16 %v653_v8, %v649_v5  ;;  %v2128_v7 = vadd.f32 %v468_v60, %v2079_v57 }
 0x187   :  { %v2103_v11 = vpop.f32.mrf.mxu0  ;;  %v2105_v0 = vpop.f32.mrf.mxu1  ;;  %v2131_v8 = vadd.f32 %v581_v61, %v2079_v57 }
 0x188   :  { %2573 = vst [vmem:[#allocation21_spill] sm:$0xff] %v2099_v9  ;;  %2574 = vst [vmem:[#allocation22_spill] sm:$0xff] %v2101_v10 }
 0x189   :  { %2575 = vst [vmem:[#allocation23_spill] sm:$0xff] %v2103_v11  ;;  %2576 = vst [vmem:[#allocation24_spill] sm:$0xff] %v2105_v0  ;;  %v472_v12 = vpop.f32.mrf.mxu0  ;;  %v585_v13 = vpop.f32.mrf.mxu1 }
 0x18a   :  { %2577 = vst [vmem:[#allocation25_spill] sm:$0xff] %v2128_v7  ;;  %2578 = vst [vmem:[#allocation26_spill] sm:$0xff] %v2131_v8  ;;  %v2134_v4 = vadd.f32 %v472_v12, %v2081_v62  ;;  %v2137_v48 = vadd.f32 %v585_v13, %v2081_v62 }
 0x18b   :  { %v2107_v14 = vpop.f32.mrf.mxu0  ;;  %v2109_v15 = vpop.f32.mrf.mxu1 }
 0x18c   :  { %2579 = vst [vmem:[#allocation27_spill] sm:$0xff] %v2134_v4  ;;  %2580 = vst [vmem:[#allocation28_spill] sm:$0xff] %v2137_v48 }
 0x18d   :  { %v478_v16 = vpop.f32.mrf.mxu0  ;;  %v591_v17 = vpop.f32.mrf.mxu1 }
 0x18e   :  { %v2140_v32 = vadd.f32 %v478_v16, %v2075_v55  ;;  %v2143_v36 = vadd.f32 %v591_v17, %v2075_v55 }
 0x18f   :  { %v2111_v18 = vpop.f32.mrf.mxu0  ;;  %v2113_v19 = vpop.f32.mrf.mxu1 }
 0x190   :  { %2581 = vst [vmem:[#allocation29_spill] sm:$0xff] %v2140_v32  ;;  %2582 = vst [vmem:[#allocation30_spill] sm:$0xff] %v2143_v36 }
 0x191   :  { %v482_v20 = vpop.f32.mrf.mxu0  ;;  %v595_v21 = vpop.f32.mrf.mxu1 }
 0x192   :  { %v2146_v60 = vadd.f32 %v482_v20, %v2077_v56  ;;  %v2149_v61 = vadd.f32 %v595_v21, %v2077_v56 }
 0x193   :  { %v2115_v22 = vpop.f32.mrf.mxu0  ;;  %v2117_v23 = vpop.f32.mrf.mxu1 }
 0x195   :  { %v488_v26 = vpop.f32.mrf.mxu0  ;;  %v601_v27 = vpop.f32.mrf.mxu1 }
 0x196   :  { %v2152_v12 = vadd.f32 %v488_v26, %v2071_v53  ;;  %v2155_v13 = vadd.f32 %v601_v27, %v2071_v53 }
 0x197   :  { %v2119_v28 = vpop.f32.mrf.mxu0  ;;  %v2121_v29 = vpop.f32.mrf.mxu1 }
 0x199   :  { %v492_v30 = vpop.f32.mrf.mxu0  ;;  %v605_v31 = vpop.f32.mrf.mxu1 }
 0x19a   :  { %v2158_v63 = vadd.f32 %v492_v30, %v2073_v54  ;;  %v2161_v16 = vadd.f32 %v605_v31, %v2073_v54 }
 0x19b   :  { %v2123_v33 = vpop.f32.mrf.mxu0  ;;  %v2125_v34 = vpop.f32.mrf.mxu1 }
 0x19d   :  { %v498_v35 = vpop.f32.mrf.mxu0  ;;  %v611_v37 = vpop.f32.mrf.mxu1 }
 0x19e   :  { %v2164_v20 = vadd.f32 %v498_v35, %v2067_v51  ;;  %v2167_v21 = vadd.f32 %v611_v37, %v2067_v51 }
 0x19f   :  { %v500_v38 = vpop.f32.mrf.mxu0  ;;  %v613_v39 = vpop.f32.mrf.mxu1 }
 0x1a0   :  { %v2170_v26 = vadd.f32 %v500_v38, %v2069_v52  ;;  %v2173_v27 = vadd.f32 %v613_v39, %v2069_v52 }
 0x1a1   :  { %v502_v40 = vpop.f32.mrf.mxu0  ;;  %v615_v41 = vpop.f32.mrf.mxu1 }
 0x1a2   :  { %v2176_v30 = vadd.f32 %v502_v40, %v2069_v52  ;;  %v2179_v31 = vadd.f32 %v615_v41, %v2069_v52 }
 0x1a3   :  { %v506_v42 = vpop.f32.mrf.mxu0  ;;  %v619_v43 = vpop.f32.mrf.mxu1 }
 0x1a5   :  { %v508_v44 = vpop.f32.mrf.mxu0  ;;  %v621_v45 = vpop.f32.mrf.mxu1 }
 0x1a6   :  { %v509_v40 = vadd.f32 %v508_v44, %v2063_v49  ;;  %v622_v58 = vadd.f32 %v621_v45, %v2063_v49 }
 0x1a7   :  { %v510_v1 = vpop.f32.mrf.mxu0  ;;  %v623_v2 = vpop.f32.mrf.mxu1 }
 0x1a8   :  { %v511_v6 = vadd.f32 %v510_v1, %v2065_v50  ;;  %v687_v0 = vmax.f32 %v509_v40, 0.0  ;;  %v669_v40 = vmax.f32 %v2149_v61, 0.0 }
 0x1a9   :  { %v512_v3 = vpop.f32.mrf.mxu0  ;;  %v625_v5 = vpop.f32.mrf.mxu1 }
 0x1aa   :  { %v513_v10 = vadd.f32 %v512_v3, %v2065_v50  ;;  %v626_v35 = vadd.f32 %v625_v5, %v2065_v50  ;;  %v690_v11 = vmax.f32 %v511_v6, 0.0  ;;  %v681_v6 = vmax.f32 %v2167_v21, 0.0 }
 0x1ab   :  { %v516_v25 = vpop.f32.mrf.mxu0  ;;  %v629_v24 = vpop.f32.mrf.mxu1 }
 0x1ac   :  { %v517_v52 = vadd.f32 %v516_v25, %v2059_v46  ;;  %v630_v41 = vadd.f32 %v629_v24, %v2059_v46  ;;  %v691_v57 = vmax.f32 %v513_v10, 0.0  ;;  %v620_v24 = vadd.f32 %v619_v43, %v2063_v49 }
 0x1ad   :  { %v518_v17 = vpop.f32.mrf.mxu0  ;;  %v631_v59 = vpop.f32.mrf.mxu1  ;;  %v677_v43 = vmax.f32 %v2161_v16, 0.0  ;;  %v671_v16 = vmax.f32 %v2152_v12, 0.0 }
 0x1ae   :  { %v519_v37 = vadd.f32 %v518_v17, %v2059_v46  ;;  %v632_v38 = vadd.f32 %v631_v59, %v2059_v46  ;;  %v624_v17 = vadd.f32 %v623_v2, %v2065_v50  ;;  %v507_v46 = vadd.f32 %v506_v42, %v2063_v49 }
 0x1af   :  { %v520_v9 = vpop.f32.mrf.mxu0  ;;  %v633_v8 = vpop.f32.mrf.mxu1  ;;  %v694_v32 = vmax.f32 %v517_v52, 0.0  ;;  %v696_v1 = vmax.f32 %v630_v41, 0.0  ;;  %v689_v50 = vmax.f32 %v622_v58, 0.0  ;;  %v497_v49 = vadd.f32 %v2123_v33, %v2067_v51 }
 0x1b0   :  { %v521_v7 = vadd.f32 %v520_v9, %v2061_v47  ;;  %v634_v39 = vadd.f32 %v633_v8, %v2061_v47  ;;  %v693_v8 = vmax.f32 %v626_v35, 0.0  ;;  %v695_v4 = vmax.f32 %v519_v37, 0.0 }
 0x1b1   :  { %v522_v3 = vpop.f32.mrf.mxu0  ;;  %v635_v5 = vpop.f32.mrf.mxu1  ;;  %v697_v45 = vmax.f32 %v632_v38, 0.0  ;;  %v685_v37 = vmax.f32 %v2179_v31, 0.0  ;;  %v743_v38 = vpack.c.bf16 %v691_v57, %v687_v0  ;;  %v610_v58 = vadd.f32 %v2125_v34, %v2067_v51 }
 0x1b2   :  { %v523_v59 = vadd.f32 %v522_v3, %v2061_v47  ;;  %v636_v9 = vadd.f32 %v635_v5, %v2061_v47  ;;  %v698_v48 = vmax.f32 %v521_v7, 0.0  ;;  %v700_v44 = vmax.f32 %v634_v39, 0.0 }
 0x1b3   :  { %v692_v47 = vmax.f32 %v624_v17, 0.0  ;;  %v683_v7 = vmax.f32 %v2176_v30, 0.0  ;;  %v745_v39 = vpack.c.bf16 %v693_v8, %v689_v50  ;;  %v679_v57 = vmax.f32 %v2164_v20, 0.0  ;;  %v2584_v17 = vld [vmem:[#allocation24_spill] sm:$0xff] }
 0x1b4   :  { %v699_v36 = vmax.f32 %v523_v59, 0.0  ;;  %v701_v25 = vmax.f32 %v636_v9, 0.0  ;;  %v746_v10 = vpack.c.bf16 %v698_v48, %v694_v32  ;;  %v748_v35 = vpack.c.bf16 %v700_v44, %v696_v1  ;;  %v2585_v59 = vld [vmem:[#allocation29_spill] sm:$0xff]  ;;  %v2586_v9 = vld [vmem:[#allocation30_spill] sm:$0xff] }
 0x1b5   :  { %v491_v48 = vadd.f32 %v2119_v28, %v2073_v54  ;;  %v604_v32 = vadd.f32 %v2121_v29, %v2073_v54  ;;  %v682_v0 = vmax.f32 %v2170_v26, 0.0  ;;  %v684_v51 = vmax.f32 %v2173_v27, 0.0 }
 0x1b6   :  { %v747_v2 = vpack.c.bf16 %v699_v36, %v695_v4  ;;  %v749_v3 = vpack.c.bf16 %v701_v25, %v697_v45  ;;  %v686_v4 = vmax.f32 %v507_v46, 0.0  ;;  %v688_v36 = vmax.f32 %v620_v24, 0.0  ;;  %v2588_v46 = vld [vmem:[#allocation28_spill] sm:$0xff] }
 0x1b7   :  { %v675_v42 = vmax.f32 %v2158_v63, 0.0  ;;  %v739_v28 = vpack.c.bf16 %v683_v7, %v679_v57  ;;  %v741_v30 = vpack.c.bf16 %v685_v37, %v681_v6  ;;  %v487_v54 = vadd.f32 %v2115_v22, %v2071_v53  ;;  %v2592_v37 = vld [vmem:[#allocation25_spill] sm:$0xff] }
 0x1b8   :  { %894 = vmatprep.subr.bf16.mxu0 %v747_v2  ;;  %1007 = vmatprep.subr.bf16.mxu1 %v749_v3  ;;  %v742_v33 = vpack.c.bf16 %v690_v11, %v686_v4  ;;  %v744_v34 = vpack.c.bf16 %v692_v47, %v688_v36  ;;  %v600_v29 = vadd.f32 %v2117_v23, %v2071_v53  ;;  %v678_v20 = vmax.f32 %v497_v49, 0.0  ;;  %v2589_v2 = vld [vmem:[#allocation12_spill] sm:$0xff]  ;;  %v2590_v3 = vld [vmem:[#allocation17_spill] sm:$0xff] }
 0x1b9   :  { %895 = vmatpush1.bf16.msra.mxu0 %v746_v10  ;;  %1008 = vmatpush1.bf16.msra.mxu1 %v748_v35  ;;  %v680_v21 = vmax.f32 %v610_v58, 0.0  ;;  %v481_v11 = vadd.f32 %v2111_v18, %v2077_v56  ;;  %v594_v63 = vadd.f32 %v2113_v19, %v2077_v56  ;;  %v673_v26 = vmax.f32 %v2155_v13, 0.0  ;;  %v2583_v13 = vld [vmem:[#allocation23_spill] sm:$0xff] }
 0x1ba   :  { %896 = vmatprep.subr.bf16.mxu0 %v743_v38  ;;  %1009 = vmatprep.subr.bf16.mxu1 %v745_v39  ;;  %v674_v22 = vmax.f32 %v491_v48, 0.0  ;;  %v676_v27 = vmax.f32 %v604_v32, 0.0  ;;  %v738_v31 = vpack.c.bf16 %v682_v0, %v678_v20  ;;  %v667_v23 = vmax.f32 %v2146_v60, 0.0  ;;  %v2593_v39 = vld [vmem:[#allocation26_spill] sm:$0xff]  ;;  %v2600_v20 = vld [vmem:[#allocation13_spill] sm:$0xff] }
 0x1bb   :  { %v740_v53 = vpack.c.bf16 %v684_v51, %v680_v21  ;;  %v735_v52 = vpack.c.bf16 %v675_v42, %v671_v16  ;;  %v737_v41 = vpack.c.bf16 %v677_v43, %v673_v26  ;;  %v477_v18 = vadd.f32 %v2107_v14, %v2075_v55  ;;  %v2595_v42 = vld [vmem:[#allocation22_spill] sm:$0xff]  ;;  %v2596_v43 = vld [vmem:[#allocation19_spill] sm:$0xff]  ;;  %v1730_v16 = vld [vmem:[%s2549_s4 + $0x10] sm:$0xff]  }
 0x1bc   :  { %v590_v56 = vadd.f32 %v2109_v15, %v2075_v55  ;;  %v670_v19 = vmax.f32 %v487_v54, 0.0  ;;  %v672_v12 = vmax.f32 %v600_v29, 0.0  ;;  %v471_v5 = vadd.f32 %v2583_v13, %v2081_v62  ;;  %v2587_v15 = vld [vmem:[#allocation27_spill] sm:$0xff]  ;;  %v2599_v54 = vld [vmem:[#allocation16_spill] sm:$0xff]  ;;  %v1728_v29 = vld [vmem:[%s2549_s4] sm:$0xff]  }
 0x1bd   :  { %897 = vmatpush1.bf16.msra.mxu0 %v742_v33  ;;  %1010 = vmatpush1.bf16.msra.mxu1 %v744_v34  ;;  %v584_v60 = vadd.f32 %v2584_v17, %v2081_v62  ;;  %v663_v61 = vmax.f32 %v2585_v59, 0.0  ;;  %v665_v8 = vmax.f32 %v2586_v9, 0.0  ;;  %v666_v14 = vmax.f32 %v481_v11, 0.0  ;;  %v2591_v62 = vld [vmem:[#allocation18_spill] sm:$0xff]  ;;  %v2594_v34 = vld [vmem:[#allocation21_spill] sm:$0xff] }
 0x1be   :  { %898 = vmatprep.subr.bf16.mxu0 %v739_v28  ;;  %1011 = vmatprep.subr.bf16.mxu1 %v741_v30  ;;  %v668_v44 = vmax.f32 %v594_v63, 0.0  ;;  %v734_v45 = vpack.c.bf16 %v674_v22, %v670_v19  ;;  %v736_v55 = vpack.c.bf16 %v676_v27, %v672_v12  ;;  %v659_v25 = vmax.f32 %v2587_v15, 0.0  ;;  %v2597_v28 = vld [vmem:[#allocation20_spill] sm:$0xff]  ;;  %v2598_v30 = vld [vmem:[#allocation15_spill] sm:$0xff]  ;;  %v2601_v21 = vld [vmem:[#allocation14_spill] sm:$0xff] }
 0x1bf   :  { %v661_v24 = vmax.f32 %v2588_v46, 0.0  ;;  %v731_v1 = vpack.c.bf16 %v667_v23, %v663_v61  ;;  %v733_v50 = vpack.c.bf16 %v669_v40, %v665_v8  ;;  %v467_v47 = vadd.f32 %v2590_v3, %v2589_v2  ;;  %v1729_v63 = vld [vmem:[%s2549_s4 + $0x8] sm:$0xff]   ;;  %v1731_v26 = vld [vmem:[%s2549_s4 + $0x18] sm:$0xff]   ;;  %v1732_v22 = vld [vmem:[%s2549_s4 + $0x20] sm:$0xff]   ;;  %v2291_v23 = vpop.permute.xlu0 %838  ;;  %v2293_v40 = vpop.permute.xlu1 %843 }
 0x1c0   :  { %v580_v10 = vadd.f32 %v2591_v62, %v2589_v2  ;;  %v662_v35 = vmax.f32 %v477_v18, 0.0  ;;  %v664_v7 = vmax.f32 %v590_v56, 0.0  ;;  %v655_v38 = vmax.f32 %v2592_v37, 0.0  ;;  %v1733_v27 = vld [vmem:[%s2549_s4 + $0x28] sm:$0xff]  }
 0x1c1   :  { %899 = vmatpush1.bf16.msra.mxu0 %v738_v31  ;;  %1012 = vmatpush1.bf16.msra.mxu1 %v740_v53  ;;  %v657_v49 = vmax.f32 %v2593_v39, 0.0  ;;  %v658_v58 = vmax.f32 %v471_v5, 0.0  ;;  %v660_v4 = vmax.f32 %v584_v60, 0.0  ;;  %v654_v6 = vmax.f32 %v467_v47, 0.0  ;;  %v1734_v31 = vld [vmem:[%s2549_s4 + $0x30] sm:$0xff]   ;;  %v1735_v53 = vld [vmem:[%s2549_s4 + $0x38] sm:$0xff]  }
 0x1c2   :  { %900 = vmatprep.subr.bf16.mxu0 %v735_v52  ;;  %1013 = vmatprep.subr.bf16.mxu1 %v737_v41  ;;  %v730_v36 = vpack.c.bf16 %v666_v14, %v662_v35  ;;  %v732_v48 = vpack.c.bf16 %v668_v44, %v664_v7  ;;  %v727_v32 = vpack.c.bf16 %v659_v25, %v655_v38  ;;  %v656_v0 = vmax.f32 %v580_v10, 0.0 }
 0x1c3   :  { %v729_v57 = vpack.c.bf16 %v661_v24, %v657_v49  ;;  %v726_v51 = vpack.c.bf16 %v658_v58, %v654_v6  ;;  %v2602_v11 = vmov 0   ;;  %v2295_v52 = vpop.permute.xlu0 %828  ;;  %v2297_v41 = vpop.permute.xlu1 %833 }
 0x1c4   :  { %v728_v33 = vpack.c.bf16 %v660_v4, %v656_v0 }
 0x1c5   :  { %901 = vmatpush1.bf16.msra.mxu0 %v734_v45  ;;  %1014 = vmatpush1.bf16.msra.mxu1 %v736_v55 }
 0x1c6   :  { %902 = vmatprep.subr.bf16.mxu0 %v731_v1  ;;  %1015 = vmatprep.subr.bf16.mxu1 %v733_v50 }
 0x1c7   :  { %v2299_v18 = vpop.permute.xlu0 %818  ;;  %v2301_v56 = vpop.permute.xlu1 %823 }
 0x1c9   :  { %903 = vmatpush1.bf16.msra.mxu0 %v730_v36  ;;  %1016 = vmatpush1.bf16.msra.mxu1 %v732_v48 }
 0x1ca   :  { %904 = vmatprep.subr.bf16.mxu0 %v727_v32  ;;  %1017 = vmatprep.subr.bf16.mxu1 %v729_v57 }
 0x1cb   :  { %v2303_v19 = vpop.permute.xlu0 %808  ;;  %v2305_v12 = vpop.permute.xlu1 %813 }
 0x1cd   :  { %905 = vmatpush1.bf16.msra.mxu0 %v726_v51  ;;  %1018 = vmatpush1.bf16.msra.mxu1 %v728_v33 }
 0x1ce   :  { %906 = vmatprep.subr.bf16.mxu0 %v2594_v34  ;;  %1019 = vmatprep.subr.bf16.mxu1 %v2595_v42 }
 0x1cf   :  { %v2307_v13 = vpop.permute.xlu0 %798  ;;  %v2309_v5 = vpop.permute.xlu1 %803 }
 0x1d1   :  { %907 = vmatpush1.bf16.msra.mxu0 %v2596_v43  ;;  %1020 = vmatpush1.bf16.msra.mxu1 %v2597_v28 }
 0x1d2   :  { %908 = vmatprep.subr.bf16.mxu0 %v2598_v30  ;;  %1021 = vmatprep.subr.bf16.mxu1 %v2599_v54 }
 0x1d3   :  { %v2311_v17 = vpop.permute.xlu0 %788  ;;  %v2313_v60 = vpop.permute.xlu1 %793 }
 0x1d4   :  { %2603 = vst [vmem:[#allocation23_spill] sm:$0xff] %v2311_v17 }
 0x1d5   :  { %909 = vmatpush1.bf16.msra.mxu0 %v2600_v20  ;;  %1022 = vmatpush1.bf16.msra.mxu1 %v2601_v21 }
 0x1d7   :  { %v779_v59 = vpop.permute.xlu0 %778  ;;  %v784_v61 = vpop.permute.xlu1 %783 }
 0x1d8   :  { %927 = vmatmul.mubr.bf16.vlgmr.msra.gmra.mxu0 %v1728_v29  ;;  %1040 = vmatmul.mubr.bf16.vlgmr.msra.gmra.mxu1 %v1728_v29 }
 0x1d9   :  { %936 = vmatprep.mubr.bf16.mxu0 %v2602_v11  ;;  %1049 = vmatprep.mubr.bf16.mxu1 %v2602_v11 }
 0x1db   :  { %v769_v14 = vpop.permute.xlu0 %768  ;;  %v774_v25 = vpop.permute.xlu1 %773 }
 0x1e0   :  { %937 = vmatmul.mubr.bf16.gmra.mxu0 %v1729_v63  ;;  %1050 = vmatmul.mubr.bf16.gmra.mxu1 %v1729_v63 }
 0x1e1   :  { %946 = vmatprep.mubr.bf16.mxu0 %v2602_v11  ;;  %1059 = vmatprep.mubr.bf16.mxu1 %v2602_v11 }
 0x1e8   :  { %947 = vmatmul.mubr.bf16.gmra.mxu0 %v1730_v16  ;;  %1060 = vmatmul.mubr.bf16.gmra.mxu1 %v1730_v16 }
 0x1e9   :  { %956 = vmatprep.mubr.bf16.mxu0 %v2602_v11  ;;  %1069 = vmatprep.mubr.bf16.mxu1 %v2602_v11 }
 0x1f0   :  { %957 = vmatmul.mubr.bf16.gmra.mxu0 %v1731_v26  ;;  %1070 = vmatmul.mubr.bf16.gmra.mxu1 %v1731_v26 }
 0x1f1   :  { %966 = vmatprep.mubr.bf16.mxu0 %v2602_v11  ;;  %1079 = vmatprep.mubr.bf16.mxu1 %v2602_v11 }
 0x1f8   :  { %967 = vmatmul.mubr.bf16.gmra.mxu0 %v1732_v22  ;;  %1080 = vmatmul.mubr.bf16.gmra.mxu1 %v1732_v22 }
 0x1f9   :  { %976 = vmatprep.mubr.bf16.mxu0 %v2602_v11  ;;  %1089 = vmatprep.mubr.bf16.mxu1 %v2602_v11 }
 0x200   :  { %977 = vmatmul.mubr.bf16.gmra.mxu0 %v1733_v27  ;;  %1090 = vmatmul.mubr.bf16.gmra.mxu1 %v1733_v27 }
 0x201   :  { %986 = vmatprep.mubr.bf16.mxu0 %v2602_v11  ;;  %1099 = vmatprep.mubr.bf16.mxu1 %v2602_v11 }
 0x208   :  { %987 = vmatmul.mubr.bf16.gmra.mxu0 %v1734_v31  ;;  %1100 = vmatmul.mubr.bf16.gmra.mxu1 %v1734_v31 }
 0x209   :  { %996 = vmatprep.mubr.bf16.mxu0 %v2602_v11  ;;  %1109 = vmatprep.mubr.bf16.mxu1 %v2602_v11 }
 0x210   :  { %997 = vmatmul.mubr.bf16.gmra.mxu0 %v1735_v53  ;;  %1110 = vmatmul.mubr.bf16.gmra.mxu1 %v1735_v53 }
 0x211   :  { %1288 = vmatprep.mubr.bf16.mxu0 %v2602_v11  ;;  %1341 = vmatprep.mubr.bf16.mxu1 %v2602_v11 }
 0x298   :  { %v928_v9 = vpop.f32.mrf.mxu0  ;;  %v1041_v8 = vpop.f32.mrf.mxu1 }
 0x299   :  { %v929_v44 = vadd.f32 %v928_v9, %v769_v14  ;;  %v1042_v45 = vadd.f32 %v1041_v8, %v769_v14 }
 0x29a   :  { %v930_v55 = vpop.f32.mrf.mxu0  ;;  %v1043_v15 = vpop.f32.mrf.mxu1 }
 0x29b   :  { %v931_v46 = vadd.f32 %v930_v55, %v769_v14  ;;  %v1044_v24 = vadd.f32 %v1043_v15, %v769_v14  ;;  %v1120_v47 = vmax.f32 %v929_v44, 0.0  ;;  %v1122_v62 = vmax.f32 %v1042_v45, 0.0 }
 0x29c   :  { %v932_v1 = vpop.f32.mrf.mxu0  ;;  %v1045_v50 = vpop.f32.mrf.mxu1 }
 0x29d   :  { %v933_v2 = vadd.f32 %v932_v1, %v774_v25  ;;  %v1046_v3 = vadd.f32 %v1045_v50, %v774_v25  ;;  %v1121_v49 = vmax.f32 %v931_v46, 0.0  ;;  %v1123_v58 = vmax.f32 %v1044_v24, 0.0 }
 0x29e   :  { %v934_v10 = vpop.f32.mrf.mxu0  ;;  %v1047_v35 = vpop.f32.mrf.mxu1 }
 0x29f   :  { %v1124_v7 = vmax.f32 %v933_v2, 0.0  ;;  %v1126_v37 = vmax.f32 %v1046_v3, 0.0  ;;  %v935_v38 = vadd.f32 %v934_v10, %v774_v25  ;;  %v1048_v39 = vadd.f32 %v1047_v35, %v774_v25 }
 0x2a0   :  { %v938_v4 = vpop.f32.mrf.mxu0  ;;  %v1051_v36 = vpop.f32.mrf.mxu1 }
 0x2a1   :  { %v2315_v48 = vpack.c.bf16 %v1124_v7, %v1120_v47  ;;  %v2317_v32 = vpack.c.bf16 %v1126_v37, %v1122_v62  ;;  %v1125_v57 = vmax.f32 %v935_v38, 0.0  ;;  %v1127_v6 = vmax.f32 %v1048_v39, 0.0 }
 0x2a2   :  { %v939_v0 = vadd.f32 %v938_v4, %v779_v59  ;;  %v1052_v51 = vadd.f32 %v1051_v36, %v779_v59  ;;  %v940_v33 = vpop.f32.mrf.mxu0  ;;  %v1053_v34 = vpop.f32.mrf.mxu1 }
 0x2a3   :  { %2604 = vst [vmem:[#allocation24_spill] sm:$0xff] %v2315_v48  ;;  %2605 = vst [vmem:[#allocation29_spill] sm:$0xff] %v2317_v32  ;;  %v2319_v42 = vpack.c.bf16 %v1125_v57, %v1121_v49  ;;  %v2321_v43 = vpack.c.bf16 %v1127_v6, %v1123_v58  ;;  %v941_v28 = vadd.f32 %v940_v33, %v779_v59 }
 0x2a4   :  { %v1054_v30 = vadd.f32 %v1053_v34, %v779_v59  ;;  %v942_v54 = vpop.f32.mrf.mxu0  ;;  %v1055_v29 = vpop.f32.mrf.mxu1  ;;  %v1128_v63 = vmax.f32 %v939_v0, 0.0  ;;  %v1130_v16 = vmax.f32 %v1052_v51, 0.0 }
 0x2a5   :  { %2606 = vst [vmem:[#allocation30_spill] sm:$0xff] %v2319_v42  ;;  %2607 = vst [vmem:[#allocation27_spill] sm:$0xff] %v2321_v43  ;;  %v943_v20 = vadd.f32 %v942_v54, %v784_v61  ;;  %v1056_v21 = vadd.f32 %v1055_v29, %v784_v61  ;;  %v1129_v8 = vmax.f32 %v941_v28, 0.0 }
 0x2a6   :  { %v944_v26 = vpop.f32.mrf.mxu0  ;;  %v1057_v22 = vpop.f32.mrf.mxu1  ;;  %v1131_v14 = vmax.f32 %v1054_v30, 0.0 }
 0x2a7   :  { %v1132_v27 = vmax.f32 %v943_v20, 0.0  ;;  %v1134_v31 = vmax.f32 %v1056_v21, 0.0  ;;  %v945_v53 = vadd.f32 %v944_v26, %v784_v61  ;;  %v1058_v9 = vadd.f32 %v1057_v22, %v784_v61 }
 0x2a8   :  { %v2323_v44 = vpop.f32.mrf.mxu0  ;;  %v2325_v45 = vpop.f32.mrf.mxu1 }
 0x2a9   :  { %2608 = vst [vmem:[#allocation28_spill] sm:$0xff] %v2323_v44  ;;  %2609 = vst [vmem:[#allocation12_spill] sm:$0xff] %v2325_v45  ;;  %v2327_v55 = vpack.c.bf16 %v1132_v27, %v1128_v63  ;;  %v2329_v59 = vpack.c.bf16 %v1134_v31, %v1130_v16  ;;  %v1133_v15 = vmax.f32 %v945_v53, 0.0  ;;  %v1135_v25 = vmax.f32 %v1058_v9, 0.0 }
 0x2aa   :  { %v950_v46 = vpop.f32.mrf.mxu0  ;;  %v1063_v24 = vpop.f32.mrf.mxu1 }
 0x2ab   :  { %2610 = vst [vmem:[#allocation17_spill] sm:$0xff] %v2327_v55  ;;  %2611 = vst [vmem:[#allocation18_spill] sm:$0xff] %v2329_v59  ;;  %v2331_v1 = vpack.c.bf16 %v1133_v15, %v1129_v8  ;;  %v2333_v50 = vpack.c.bf16 %v1135_v25, %v1131_v14  ;;  %v2360_v14 = vadd.f32 %v950_v46, %v2311_v17 }
 0x2ac   :  { %v2335_v2 = vpop.f32.mrf.mxu0  ;;  %v2337_v61 = vpop.f32.mrf.mxu1  ;;  %v2363_v15 = vadd.f32 %v1063_v24, %v2311_v17 }
 0x2ad   :  { %2612 = vst [vmem:[#allocation25_spill] sm:$0xff] %v2331_v1  ;;  %2613 = vst [vmem:[#allocation26_spill] sm:$0xff] %v2333_v50 }
 0x2ae   :  { %2614 = vst [vmem:[#allocation21_spill] sm:$0xff] %v2335_v2  ;;  %2615 = vst [vmem:[#allocation22_spill] sm:$0xff] %v2337_v61  ;;  %v954_v3 = vpop.f32.mrf.mxu0  ;;  %v1067_v47 = vpop.f32.mrf.mxu1 }
 0x2af   :  { %2616 = vst [vmem:[#allocation19_spill] sm:$0xff] %v2360_v14  ;;  %2617 = vst [vmem:[#allocation20_spill] sm:$0xff] %v2363_v15  ;;  %v2366_v25 = vadd.f32 %v954_v3, %v2313_v60  ;;  %v2369_v11 = vadd.f32 %v1067_v47, %v2313_v60 }
 0x2b0   :  { %v2339_v62 = vpop.f32.mrf.mxu0  ;;  %v2341_v10 = vpop.f32.mrf.mxu1 }
 0x2b1   :  { %2618 = vst [vmem:[#allocation15_spill] sm:$0xff] %v2366_v25  ;;  %2619 = vst [vmem:[#allocation16_spill] sm:$0xff] %v2369_v11 }
 0x2b2   :  { %v960_v35 = vpop.f32.mrf.mxu0  ;;  %v1073_v7 = vpop.f32.mrf.mxu1 }
 0x2b3   :  { %v2372_v43 = vadd.f32 %v960_v35, %v2307_v13  ;;  %v2375_v42 = vadd.f32 %v1073_v7, %v2307_v13 }
 0x2b4   :  { %v2343_v37 = vpop.f32.mrf.mxu0  ;;  %v2345_v38 = vpop.f32.mrf.mxu1 }
 0x2b5   :  { %2620 = vst [vmem:[#allocation13_spill] sm:$0xff] %v2372_v43  ;;  %2621 = vst [vmem:[#allocation14_spill] sm:$0xff] %v2375_v42 }
 0x2b6   :  { %v964_v39 = vpop.f32.mrf.mxu0  ;;  %v1077_v49 = vpop.f32.mrf.mxu1 }
 0x2b7   :  { %v2378_v46 = vadd.f32 %v964_v39, %v2309_v5  ;;  %v2381_v24 = vadd.f32 %v1077_v49, %v2309_v5 }
 0x2b8   :  { %v2347_v58 = vpop.f32.mrf.mxu0  ;;  %v2349_v4 = vpop.f32.mrf.mxu1 }
 0x2ba   :  { %v970_v36 = vpop.f32.mrf.mxu0  ;;  %v1083_v57 = vpop.f32.mrf.mxu1 }
 0x2bb   :  { %v2384_v3 = vadd.f32 %v970_v36, %v2303_v19  ;;  %v2387_v47 = vadd.f32 %v1083_v57, %v2303_v19 }
 0x2bc   :  { %v2351_v6 = vpop.f32.mrf.mxu0  ;;  %v2353_v0 = vpop.f32.mrf.mxu1 }
 0x2be   :  { %v974_v51 = vpop.f32.mrf.mxu0  ;;  %v1087_v33 = vpop.f32.mrf.mxu1 }
 0x2bf   :  { %v2390_v59 = vadd.f32 %v974_v51, %v2305_v12  ;;  %v2393_v35 = vadd.f32 %v1087_v33, %v2305_v12 }
 0x2c0   :  { %v2355_v34 = vpop.f32.mrf.mxu0  ;;  %v2357_v28 = vpop.f32.mrf.mxu1 }
 0x2c2   :  { %v980_v30 = vpop.f32.mrf.mxu0  ;;  %v1093_v54 = vpop.f32.mrf.mxu1 }
 0x2c3   :  { %v2396_v39 = vadd.f32 %v980_v30, %v2299_v18  ;;  %v2399_v49 = vadd.f32 %v1093_v54, %v2299_v18 }
 0x2c4   :  { %v982_v29 = vpop.f32.mrf.mxu0  ;;  %v1095_v20 = vpop.f32.mrf.mxu1 }
 0x2c5   :  { %v2402_v36 = vadd.f32 %v982_v29, %v2301_v56  ;;  %v2405_v57 = vadd.f32 %v1095_v20, %v2301_v56 }
 0x2c6   :  { %v984_v21 = vpop.f32.mrf.mxu0  ;;  %v1097_v63 = vpop.f32.mrf.mxu1 }
 0x2c7   :  { %v2408_v51 = vadd.f32 %v984_v21, %v2301_v56  ;;  %v2411_v33 = vadd.f32 %v1097_v63, %v2301_v56 }
 0x2c8   :  { %v988_v16 = vpop.f32.mrf.mxu0  ;;  %v1101_v26 = vpop.f32.mrf.mxu1 }
 0x2ca   :  { %v990_v22 = vpop.f32.mrf.mxu0  ;;  %v1103_v27 = vpop.f32.mrf.mxu1 }
 0x2cb   :  { %v991_v21 = vadd.f32 %v990_v22, %v2295_v52  ;;  %v1104_v45 = vadd.f32 %v1103_v27, %v2295_v52 }
 0x2cc   :  { %v992_v31 = vpop.f32.mrf.mxu0  ;;  %v1105_v53 = vpop.f32.mrf.mxu1 }
 0x2cd   :  { %v993_v44 = vadd.f32 %v992_v31, %v2297_v41  ;;  %v1169_v61 = vmax.f32 %v991_v21, 0.0  ;;  %v1151_v21 = vmax.f32 %v2381_v24, 0.0 }
 0x2ce   :  { %v994_v9 = vpop.f32.mrf.mxu0  ;;  %v1107_v8 = vpop.f32.mrf.mxu1 }
 0x2cf   :  { %v995_v50 = vadd.f32 %v994_v9, %v2297_v41  ;;  %v1108_v30 = vadd.f32 %v1107_v8, %v2297_v41  ;;  %v1172_v2 = vmax.f32 %v993_v44, 0.0  ;;  %v1163_v44 = vmax.f32 %v2399_v49, 0.0 }
 0x2d0   :  { %v998_v32 = vpop.f32.mrf.mxu0  ;;  %v1111_v48 = vpop.f32.mrf.mxu1 }
 0x2d1   :  { %v999_v56 = vadd.f32 %v998_v32, %v2291_v23  ;;  %v1112_v63 = vadd.f32 %v1111_v48, %v2291_v23  ;;  %v1173_v17 = vmax.f32 %v995_v50, 0.0  ;;  %v1102_v48 = vadd.f32 %v1101_v26, %v2295_v52 }
 0x2d2   :  { %v1000_v7 = vpop.f32.mrf.mxu0  ;;  %v1113_v55 = vpop.f32.mrf.mxu1  ;;  %v1157_v26 = vmax.f32 %v2390_v59, 0.0  ;;  %v1076_v59 = vadd.f32 %v2345_v38, %v2309_v5 }
 0x2d3   :  { %v1001_v54 = vadd.f32 %v1000_v7, %v2291_v23  ;;  %v1114_v29 = vadd.f32 %v1113_v55, %v2291_v23  ;;  %v1106_v7 = vadd.f32 %v1105_v53, %v2297_v41  ;;  %v989_v23 = vadd.f32 %v988_v16, %v2295_v52 }
 0x2d4   :  { %v1002_v1 = vpop.f32.mrf.mxu0  ;;  %v1115_v15 = vpop.f32.mrf.mxu1  ;;  %v1176_v43 = vmax.f32 %v999_v56, 0.0  ;;  %v1178_v31 = vmax.f32 %v1112_v63, 0.0  ;;  %v1171_v41 = vmax.f32 %v1104_v45, 0.0  ;;  %v979_v52 = vadd.f32 %v2355_v34, %v2299_v18 }
 0x2d5   :  { %v1003_v14 = vadd.f32 %v1002_v1, %v2293_v40  ;;  %v1116_v20 = vadd.f32 %v1115_v15, %v2293_v40  ;;  %v1175_v15 = vmax.f32 %v1108_v30, 0.0  ;;  %v1177_v25 = vmax.f32 %v1001_v54, 0.0 }
 0x2d6   :  { %v1004_v9 = vpop.f32.mrf.mxu0  ;;  %v1117_v8 = vpop.f32.mrf.mxu1  ;;  %v1179_v27 = vmax.f32 %v1114_v29, 0.0  ;;  %v1167_v54 = vmax.f32 %v2411_v33, 0.0  ;;  %v1213_v29 = vpack.c.bf16 %v1173_v17, %v1169_v61  ;;  %v1092_v45 = vadd.f32 %v2357_v28, %v2299_v18 }
 0x2d7   :  { %v1005_v55 = vadd.f32 %v1004_v9, %v2293_v40  ;;  %v1118_v1 = vadd.f32 %v1117_v8, %v2293_v40  ;;  %v1180_v11 = vmax.f32 %v1003_v14, 0.0  ;;  %v1182_v22 = vmax.f32 %v1116_v20, 0.0 }
 0x2d8   :  { %v1174_v40 = vmax.f32 %v1106_v7, 0.0  ;;  %v1165_v14 = vmax.f32 %v2408_v51, 0.0  ;;  %v1215_v20 = vpack.c.bf16 %v1175_v15, %v1171_v41  ;;  %v1170_v16 = vmax.f32 %v1102_v48, 0.0  ;;  %v2623_v7 = vld [vmem:[#allocation22_spill] sm:$0xff] }
 0x2d9   :  { %v1181_v42 = vmax.f32 %v1005_v55, 0.0  ;;  %v1183_v32 = vmax.f32 %v1118_v1, 0.0  ;;  %v1216_v50 = vpack.c.bf16 %v1180_v11, %v1176_v43  ;;  %v1218_v30 = vpack.c.bf16 %v1182_v22, %v1178_v31  ;;  %v2624_v55 = vld [vmem:[#allocation13_spill] sm:$0xff]  ;;  %v2625_v1 = vld [vmem:[#allocation14_spill] sm:$0xff] }
 0x2da   :  { %v973_v11 = vadd.f32 %v2351_v6, %v2305_v12  ;;  %v1086_v43 = vadd.f32 %v2353_v0, %v2305_v12  ;;  %v1161_v17 = vmax.f32 %v2396_v39, 0.0  ;;  %v1164_v61 = vmax.f32 %v2402_v36, 0.0 }
 0x2db   :  { %v1217_v53 = vpack.c.bf16 %v1181_v42, %v1177_v25  ;;  %v1219_v9 = vpack.c.bf16 %v1183_v32, %v1179_v27  ;;  %v1168_v42 = vmax.f32 %v989_v23, 0.0  ;;  %v1166_v18 = vmax.f32 %v2405_v57, 0.0  ;;  %v2627_v23 = vld [vmem:[#allocation16_spill] sm:$0xff] }
 0x2dc   :  { %v1214_v28 = vpack.c.bf16 %v1174_v40, %v1170_v16  ;;  %v1159_v25 = vmax.f32 %v2393_v35, 0.0  ;;  %v1209_v6 = vpack.c.bf16 %v1165_v14, %v1161_v17  ;;  %v1211_v51 = vpack.c.bf16 %v1167_v54, %v1163_v44  ;;  %v2631_v54 = vld [vmem:[#allocation19_spill] sm:$0xff] }
 0x2dd   :  { %1256 = vmatprep.subr.bf16.mxu0 %v1217_v53  ;;  %1309 = vmatprep.subr.bf16.mxu1 %v1219_v9  ;;  %v1212_v34 = vpack.c.bf16 %v1172_v2, %v1168_v42  ;;  %v969_v12 = vadd.f32 %v2347_v58, %v2303_v19  ;;  %v1082_v0 = vadd.f32 %v2349_v4, %v2303_v19  ;;  %v1160_v39 = vmax.f32 %v979_v52, 0.0  ;;  %v2628_v53 = vld [vmem:[#allocation23_spill] sm:$0xff]  ;;  %v2629_v9 = vld [vmem:[#allocation28_spill] sm:$0xff] }
 0x2de   :  { %1257 = vmatpush1.bf16.msra.mxu0 %v1216_v50  ;;  %1310 = vmatpush1.bf16.msra.mxu1 %v1218_v30  ;;  %v1162_v49 = vmax.f32 %v1092_v45, 0.0  ;;  %v963_v2 = vadd.f32 %v2343_v37, %v2309_v5  ;;  %v1153_v35 = vmax.f32 %v2384_v3, 0.0  ;;  %v1155_v36 = vmax.f32 %v2387_v47, 0.0  ;;  %v2622_v47 = vld [vmem:[#allocation21_spill] sm:$0xff] }
 0x2df   :  { %1258 = vmatprep.subr.bf16.mxu0 %v1213_v29  ;;  %1311 = vmatprep.subr.bf16.mxu1 %v1215_v20  ;;  %v1156_v58 = vmax.f32 %v973_v11, 0.0  ;;  %v1158_v57 = vmax.f32 %v1086_v43, 0.0  ;;  %v1208_v33 = vpack.c.bf16 %v1164_v61, %v1160_v39  ;;  %v1149_v4 = vmax.f32 %v2378_v46, 0.0  ;;  %v2632_v20 = vld [vmem:[#allocation20_spill] sm:$0xff] }
 0x2e0   :  { %v1210_v19 = vpack.c.bf16 %v1166_v18, %v1162_v49  ;;  %v1205_v56 = vpack.c.bf16 %v1157_v26, %v1153_v35  ;;  %v1207_v63 = vpack.c.bf16 %v1159_v25, %v1155_v36  ;;  %v959_v37 = vadd.f32 %v2339_v62, %v2307_v13  ;;  %v2634_v26 = vld [vmem:[#allocation26_spill] sm:$0xff]  ;;  %v2635_v25 = vld [vmem:[#allocation17_spill] sm:$0xff]  ;;  %v2639_v39 = vld [vmem:[#allocation24_spill] sm:$0xff] }
 0x2e1   :  { %v1072_v5 = vadd.f32 %v2341_v10, %v2307_v13  ;;  %v1152_v38 = vmax.f32 %v969_v12, 0.0  ;;  %v1154_v3 = vmax.f32 %v1082_v0, 0.0  ;;  %v953_v8 = vadd.f32 %v2622_v47, %v2313_v60  ;;  %v2626_v10 = vld [vmem:[#allocation15_spill] sm:$0xff]  ;;  %v1736_v0 = vld [vmem:[%s2550_s5] sm:$0xff]   ;;  %v2640_v49 = vld [vmem:[#allocation29_spill] sm:$0xff] }
 0x2e2   :  { %1259 = vmatpush1.bf16.msra.mxu0 %v1212_v34  ;;  %1312 = vmatpush1.bf16.msra.mxu1 %v1214_v28  ;;  %v1066_v46 = vadd.f32 %v2623_v7, %v2313_v60  ;;  %v1145_v24 = vmax.f32 %v2624_v55, 0.0  ;;  %v1147_v15 = vmax.f32 %v2625_v1, 0.0  ;;  %v1148_v62 = vmax.f32 %v963_v2, 0.0  ;;  %v2630_v60 = vld [vmem:[#allocation12_spill] sm:$0xff]  ;;  %v2633_v28 = vld [vmem:[#allocation25_spill] sm:$0xff]  ;;  %v2638_v12 = vld [vmem:[#allocation27_spill] sm:$0xff] }
 0x2e3   :  { %1260 = vmatprep.subr.bf16.mxu0 %v1209_v6  ;;  %1313 = vmatprep.subr.bf16.mxu1 %v1211_v51  ;;  %v1150_v22 = vmax.f32 %v1076_v59, 0.0  ;;  %v1204_v27 = vpack.c.bf16 %v1156_v58, %v1152_v38  ;;  %v1206_v13 = vpack.c.bf16 %v1158_v57, %v1154_v3  ;;  %v1141_v32 = vmax.f32 %v2626_v10, 0.0  ;;  %v2636_v6 = vld [vmem:[#allocation18_spill] sm:$0xff]  ;;  %v1737_v59 = vld [vmem:[%s2550_s5 + $0x8] sm:$0xff]  }
 0x2e4   :  { %v1143_v48 = vmax.f32 %v2627_v23, 0.0  ;;  %v1201_v31 = vpack.c.bf16 %v1149_v4, %v1145_v24  ;;  %v1203_v41 = vpack.c.bf16 %v1151_v21, %v1147_v15  ;;  %v949_v40 = vadd.f32 %v2629_v9, %v2628_v53  ;;  %v2637_v51 = vld [vmem:[#allocation30_spill] sm:$0xff]  ;;  %v1242_v4 = vpop.permute.xlu1 %1241 }
 0x2e5   :  { %v1062_v50 = vadd.f32 %v2630_v60, %v2628_v53  ;;  %v1144_v30 = vmax.f32 %v959_v37, 0.0  ;;  %v1146_v14 = vmax.f32 %v1072_v5, 0.0  ;;  %v1137_v29 = vmax.f32 %v2631_v54, 0.0 }
 0x2e6   :  { %1261 = vmatpush1.bf16.msra.mxu0 %v1208_v33  ;;  %1314 = vmatpush1.bf16.msra.mxu1 %v1210_v19  ;;  %v1139_v52 = vmax.f32 %v2632_v20, 0.0  ;;  %v1140_v45 = vmax.f32 %v953_v8, 0.0  ;;  %v1142_v42 = vmax.f32 %v1066_v46, 0.0  ;;  %v1136_v44 = vmax.f32 %v949_v40, 0.0 }
 0x2e7   :  { %1262 = vmatprep.subr.bf16.mxu0 %v1205_v56  ;;  %1315 = vmatprep.subr.bf16.mxu1 %v1207_v63  ;;  %v1200_v16 = vpack.c.bf16 %v1148_v62, %v1144_v30  ;;  %v1202_v11 = vpack.c.bf16 %v1150_v22, %v1146_v14  ;;  %v1197_v43 = vpack.c.bf16 %v1141_v32, %v1137_v29  ;;  %v1138_v61 = vmax.f32 %v1062_v50, 0.0  ;;  %v1237_v63 = vpop.permute.xlu0 %1236 }
 0x2e8   :  { %v1199_v17 = vpack.c.bf16 %v1143_v48, %v1139_v52  ;;  %v1196_v18 = vpack.c.bf16 %v1140_v45, %v1136_v44  ;;  %v2641_v2 = vmov 0   ;;  %v1232_v47 = vpop.permute.xlu1 %1231 }
 0x2e9   :  { %v1198_v34 = vpack.c.bf16 %v1142_v42, %v1138_v61 }
 0x2ea   :  { %1263 = vmatpush1.bf16.msra.mxu0 %v1204_v27  ;;  %1316 = vmatpush1.bf16.msra.mxu1 %v1206_v13 }
 0x2eb   :  { %1264 = vmatprep.subr.bf16.mxu0 %v1201_v31  ;;  %1317 = vmatprep.subr.bf16.mxu1 %v1203_v41  ;;  %v1227_v24 = vpop.permute.xlu0 %1226 }
 0x2ee   :  { %1265 = vmatpush1.bf16.msra.mxu0 %v1200_v16  ;;  %1318 = vmatpush1.bf16.msra.mxu1 %v1202_v11 }
 0x2ef   :  { %1266 = vmatprep.subr.bf16.mxu0 %v1197_v43  ;;  %1319 = vmatprep.subr.bf16.mxu1 %v1199_v17 }
 0x2f2   :  { %1267 = vmatpush1.bf16.msra.mxu0 %v1196_v18  ;;  %1320 = vmatpush1.bf16.msra.mxu1 %v1198_v34 }
 0x2f3   :  { %1268 = vmatprep.subr.bf16.mxu0 %v2633_v28  ;;  %1321 = vmatprep.subr.bf16.mxu1 %v2634_v26 }
 0x2f6   :  { %1269 = vmatpush1.bf16.msra.mxu0 %v2635_v25  ;;  %1322 = vmatpush1.bf16.msra.mxu1 %v2636_v6 }
 0x2f7   :  { %1270 = vmatprep.subr.bf16.mxu0 %v2637_v51  ;;  %1323 = vmatprep.subr.bf16.mxu1 %v2638_v12 }
 0x2fa   :  { %1271 = vmatpush1.bf16.msra.mxu0 %v2639_v39  ;;  %1324 = vmatpush1.bf16.msra.mxu1 %v2640_v49  ;;  %v1378_v39 = vld [vmem:[%s2551_s6] sm:$0x1]  ;;  %v1791_v49 = vmov 1983009808  }
 0x2fd   :  { %1289 = vmatmul.mubr.bf16.vlgmr.msra.gmra.mxu0 %v1736_v0  ;;  %1342 = vmatmul.mubr.bf16.vlgmr.msra.gmra.mxu1 %v1736_v0 }
 0x2fe   :  { %1298 = vmatprep.mubr.bf16.mxu0 %v2641_v2  ;;  %1351 = vmatprep.mubr.bf16.mxu1 %v2641_v2 }
 0x305   :  { %1299 = vmatmul.mubr.bf16.gmra.mxu0 %v1737_v59  ;;  %1352 = vmatmul.mubr.bf16.gmra.mxu1 %v1737_v59  ;;  %v1502_v59 = vstv %s1501_s28 }
 0x306   :  { %1428 = vmatprep.mubr.bf16.mxu0 %v2641_v2  ;;  %1469 = vmatprep.mubr.bf16.mxu1 %v2641_v2  ;;  %v1485_v2 = vunpack.c.l.s4 %v1791_v49 }
 0x3bd   :  { %v1290_v35 = vpop.f32.mrf.mxu0  ;;  %v1343_v36 = vpop.f32.mrf.mxu1 }
 0x3be   :  { %v1291_v52 = vadd.f32 %v1290_v35, %v1227_v24  ;;  %v1344_v45 = vadd.f32 %v1343_v36, %v1227_v24  ;;  %v1536_v35 = vstv %s1704_s29  ;;  %v1391_v36 = vpop.permute.xlu0 %1390 }
 0x3bf   :  { %v1292_v58 = vpop.f32.mrf.mxu0  ;;  %v1345_v57 = vpop.f32.mrf.mxu1 }
 0x3c0   :  { %v1293_v27 = vadd.f32 %v1292_v58, %v1227_v24  ;;  %v1346_v13 = vadd.f32 %v1345_v57, %v1227_v24  ;;  %v1362_v6 = vmax.f32 %v1291_v52, 0.0  ;;  %v1364_v51 = vmax.f32 %v1344_v45, 0.0  ;;  %v2501_v57 = vld [vmem:[%s2546_s1] sm:$0xff] }
 0x3c1   :  { %v1294_v33 = vpop.f32.mrf.mxu0  ;;  %v1347_v19 = vpop.f32.mrf.mxu1 }
 0x3c2   :  { %v1295_v31 = vadd.f32 %v1294_v33, %v1232_v47  ;;  %v1348_v41 = vadd.f32 %v1347_v19, %v1232_v47  ;;  %v1363_v11 = vmax.f32 %v1293_v27, 0.0  ;;  %v1365_v43 = vmax.f32 %v1346_v13, 0.0 }
 0x3c3   :  { %v1296_v21 = vpop.f32.mrf.mxu0  ;;  %v1349_v56 = vpop.f32.mrf.mxu1  ;;  %v1503_v33 = vmul.f32 %v2501_v57, %v1502_v59  ;;  %v1589_v13 = vrot.slane %v2501_v57, 4 }
 0x3c4   :  { %v1297_v8 = vadd.f32 %v1296_v21, %v1232_v47  ;;  %v1350_v7 = vadd.f32 %v1349_v56, %v1232_v47  ;;  %v1366_v61 = vmax.f32 %v1295_v31, 0.0  ;;  %v1368_v18 = vmax.f32 %v1348_v41, 0.0  ;;  %v2515_v47 = vld [vmem:[%s2546_s1 + $0x8] sm:$0xff] }
 0x3c5   :  { %v1300_v37 = vpop.f32.mrf.mxu0  ;;  %v1353_v5 = vpop.f32.mrf.mxu1  ;;  %v1486_v56 = vunpack.c.0.s8 %v1485_v2 }
 0x3c6   :  { %v1301_v10 = vadd.f32 %v1300_v37, %v1237_v63  ;;  %v1354_v32 = vadd.f32 %v1353_v5, %v1237_v63  ;;  %v1367_v40 = vmax.f32 %v1297_v8, 0.0  ;;  %v1369_v60 = vmax.f32 %v1350_v7, 0.0 }
 0x3c7   :  { %v1302_v38 = vpop.f32.mrf.mxu0  ;;  %v1355_v3 = vpop.f32.mrf.mxu1  ;;  %v1379_v12 = vpack.c.bf16 %v1366_v61, %v1362_v6  ;;  %v1381_v0 = vpack.c.bf16 %v1368_v18, %v1364_v51  ;;  %v1537_v37 = vmul.f32 %v2501_v57, %v1536_v35  ;;  %v1504_v8 = vmul.f32 %v2515_v47, %v1502_v59 }
 0x3c8   :  { %v1303_v1 = vadd.f32 %v1302_v38, %v1237_v63  ;;  %v1356_v15 = vadd.f32 %v1355_v3, %v1237_v63  ;;  %v1370_v42 = vmax.f32 %v1301_v10, 0.0  ;;  %v1372_v16 = vmax.f32 %v1354_v32, 0.0 }
 0x3c9   :  { %v1304_v46 = vpop.f32.mrf.mxu0  ;;  %v1357_v55 = vpop.f32.mrf.mxu1  ;;  %v1380_v26 = vpack.c.bf16 %v1367_v40, %v1363_v11  ;;  %v1382_v25 = vpack.c.bf16 %v1369_v60, %v1365_v43  ;;  %v1538_v7 = vmul.f32 %v2515_v47, %v1536_v35 }
 0x3ca   :  { %v1305_v62 = vadd.f32 %v1304_v46, %v1242_v4  ;;  %v1358_v22 = vadd.f32 %v1357_v55, %v1242_v4  ;;  %v1371_v14 = vmax.f32 %v1303_v1, 0.0  ;;  %v1373_v54 = vmax.f32 %v1356_v15, 0.0 }
 0x3cb   :  { %v1306_v23 = vpop.f32.mrf.mxu0  ;;  %v1359_v48 = vpop.f32.mrf.mxu1 }
 0x3cc   :  { %v1307_v53 = vadd.f32 %v1306_v23, %v1242_v4  ;;  %v1360_v9 = vadd.f32 %v1359_v48, %v1242_v4  ;;  %v1374_v50 = vmax.f32 %v1305_v62, 0.0  ;;  %v1376_v30 = vmax.f32 %v1358_v22, 0.0  ;;  %v2507_v4 = vld [vmem:[%s2546_s1 + $0x10] sm:$0xff]  ;;  %v2522_v62 = vld [vmem:[%s2546_s1 + $0x18] sm:$0xff]  ;;  %v2642_v23 = vld [vmem:[#allocation11_spill] sm:$0xff]  ;;  %s1792_s1 = smov [#allocation6]  }
 0x3cd   :  { %v1505_v21 = vmul.f32 %v2507_v4, %v1502_v59  ;;  %v1539_v38 = vmul.f32 %v2507_v4, %v1536_v35  ;;  %v1506_v22 = vmul.f32 %v2522_v62, %v1502_v59  ;;  %v1540_v27 = vmul.f32 %v2522_v62, %v1536_v35  ;;  %s1646_s15 = sshll.u32 %s1792_s1, 4  ;;  %s1647_s15 = int_to_ptr.vmem [resolvable:$true] %s1646_s15 }
 0x3ce   :  { %v1375_v29 = vmax.f32 %v1307_v53, 0.0  ;;  %v1377_v20 = vmax.f32 %v1360_v9, 0.0  ;;  %v1383_v34 = vpack.c.bf16 %v1374_v50, %v1370_v42  ;;  %v1385_v28 = vpack.c.bf16 %v1376_v30, %v1372_v16  ;;  %s1754_s16 = scalar_lea.vmem %s1647_s15, 128  ;;  %p1759_p6 = scmp.lt.s32.totalorder %s1647_s15, %s1647_s15 }
 0x3cf   :  { %v1489_v48 = vsub.s32 %v1486_v56, %v2642_v23  ;;  %v1591_v56 = vrot.slane %v2507_v4, 4  ;;  %p1755_p5 = scmp.ne.s32.totalorder %s1647_s15, %s1754_s16  ;;  %p1760_p7 = scmp.lt.s32.totalorder %s1754_s16, %s1754_s16 }
 0x3d0   :  { %v1384_v17 = vpack.c.bf16 %v1375_v29, %v1371_v14  ;;  %v1386_v44 = vpack.c.bf16 %v1377_v20, %v1373_v54 }
 0x3d1   :  { %p1761_p8 = por %p1760_p7, %p1759_p6 }
 0x3d2   :  { %1408 = vmatprep.subr.bf16.mxu0 %v1384_v17  ;;  %1449 = vmatprep.subr.bf16.mxu1 %v1386_v44 }
 0x3d3   :  { %1409 = vmatpush1.bf16.msra.mxu0 %v1383_v34  ;;  %1450 = vmatpush1.bf16.msra.mxu1 %v1385_v28  ;;  %p1762_p9 = pnand %p1761_p8, %p1755_p5 }
 0x3d4   :  { %1410 = vmatprep.subr.bf16.mxu0 %v1380_v26  ;;  %1451 = vmatprep.subr.bf16.mxu1 %v1382_v25 }
 0x3d7   :  { %1411 = vmatpush1.bf16.msra.mxu0 %v1379_v12  ;;  %1452 = vmatpush1.bf16.msra.mxu1 %v1381_v0 }
 0x3da   :  { %1702 = vmatmul.mubr.msk.bf16.vlgmr.msra.gmra.mxu0 %vm387_vm0, %v1378_v39  ;;  %1703 = vmatmul.mubr.msk.bf16.vlgmr.msra.gmra.mxu1 %vm387_vm0, %v1378_v39 }
 0x49a   :  { %v1430_v58 = vpop.f32.mrf.mxu0  ;;  %v1471_v19 = vpop.f32.mrf.mxu1 }
 0x49b   :  { %v1431_v63 = vadd.f32 %v1430_v58, %v1391_v36  ;;  %v1472_v5 = vadd.f32 %v1471_v19, %v1391_v36 }
 0x49c   :  { %v1432_v3 = vpop.f32.mrf.mxu0  ;;  %v1473_v46 = vpop.f32.mrf.mxu1 }
 0x49d   :  { %v1507_v55 = vrot.slane %v1431_v63, 4  ;;  %v1509_v24 = vrot.slane %v1472_v5, 4  ;;  %v1433_v1 = vadd.f32 %v1432_v3, %v1391_v36  ;;  %v1474_v15 = vadd.f32 %v1473_v46, %v1391_v36 }
 0x49e   :  { %v1434_v10 = vpop.f32.mrf.mxu0  ;;  %v1475_v32 = vpop.f32.mrf.mxu1 }
 0x49f   :  { %v1515_v31 = vadd.f32 %v1507_v55, %v1503_v33  ;;  %v1541_v41 = vadd.f32 %v1537_v37, %v1507_v55  ;;  %v1517_v53 = vadd.f32 %v1509_v24, %v1505_v21  ;;  %v1543_v9 = vadd.f32 %v1539_v38, %v1509_v24 }
 0x4a0   :  { %v1482_v40 = vcombine.low %v1431_v63, %v1433_v1  ;;  %v1508_v60 = vrot.slane %v1433_v1, 4  ;;  %v1483_v50 = vcombine.low %v1472_v5, %v1474_v15  ;;  %v1510_v30 = vrot.slane %v1474_v15, 4  ;;  %v1435_v14 = vpop.f32.mrf.mxu0  ;;  %v1476_v54 = vpop.f32.mrf.mxu1 }
 0x4a1   :  { %v1523_v29 = vrot.slane %v1515_v31, 2  ;;  %v1549_v20 = vrot.slane %v1541_v41, 2  ;;  %v1525_v52 = vrot.slane %v1517_v53, 2  ;;  %v1551_v45 = vrot.slane %v1543_v9, 2 }
 0x4a2   :  { %v1516_v42 = vadd.f32 %v1508_v60, %v1504_v8  ;;  %v1542_v16 = vadd.f32 %v1538_v7, %v1508_v60  ;;  %v1518_v11 = vadd.f32 %v1510_v30, %v1506_v22  ;;  %v1544_v43 = vadd.f32 %v1540_v27, %v1510_v30 }
 0x4a3   :  { %v1531_v17 = vsub.f32 %v2501_v57, %v1523_v29  ;;  %v1557_v44 = vsub.f32 %v2501_v57, %v1549_v20  ;;  %v1533_v61 = vsub.f32 %v2507_v4, %v1525_v52  ;;  %v1559_v18 = vsub.f32 %v2507_v4, %v1551_v45 }
 0x4a4   :  { %v1524_v34 = vrot.slane %v1516_v42, 2  ;;  %v1550_v28 = vrot.slane %v1542_v16, 2  ;;  %v1526_v26 = vrot.slane %v1518_v11, 2  ;;  %v1552_v25 = vrot.slane %v1544_v43, 2 }
 0x4a5   :  { %v1561_v6 = vmul.f32 %v1531_v17, %v1531_v17  ;;  %v1565_v51 = vmul.f32 %v1557_v44, %v1557_v44  ;;  %v1563_v12 = vmul.f32 %v1533_v61, %v1533_v61  ;;  %v1567_v0 = vmul.f32 %v1559_v18, %v1559_v18 }
 0x4a6   :  { %v1532_v39 = vsub.f32 %v2515_v47, %v1524_v34  ;;  %v1558_v49 = vsub.f32 %v2515_v47, %v1550_v28  ;;  %v1534_v2 = vsub.f32 %v2522_v62, %v1526_v26  ;;  %v1560_v59 = vsub.f32 %v2522_v62, %v1552_v25 }
 0x4a7   :  { %v1573_v35 = vrot.slane %v1565_v51, 1  ;;  %v1575_v36 = vrot.slane %v1567_v0, 1  ;;  %v1490_v58 = vrot.slane %v1482_v40, %v1489_v48  ;;  %v1497_v57 = vrot.slane %v1483_v50, %v1489_v48 }
 0x4a8   :  { %v1566_v33 = vmul.f32 %v1558_v49, %v1558_v49  ;;  %v1568_v19 = vmul.f32 %v1560_v59, %v1560_v59  ;;  %v1590_v21 = vrot.slane %v2515_v47, 4  ;;  %v1592_v5 = vrot.slane %v2522_v62, 4 }
 0x4a9   :  { %v1581_v63 = vadd.f32 %v1573_v35, %v1561_v6  ;;  %v1583_v37 = vadd.f32 %v1575_v36, %v1563_v12  ;;  %v1498_v38 = vcombine.low %v1490_v58, %v1497_v57  ;;  %v1562_v3 = vmul.f32 %v1532_v39, %v1532_v39 }
 0x4aa   :  { %v1574_v8 = vrot.slane %v1566_v33, 1  ;;  %v1564_v7 = vmul.f32 %v1534_v2, %v1534_v2  ;;  %v1576_v46 = vrot.slane %v1568_v19, 1 }
 0x4ab   :  { %v1597_v55 = vmul.f32 %v1589_v13, %v1581_v63  ;;  %1500 = vst [vmem:[#allocation6] sm:$0xff] %v1498_v38  ;;  %v1599_v15 = vmul.f32 %v1591_v56, %v1583_v37 }
 0x4ac   :  { %v1582_v24 = vadd.f32 %v1574_v8, %v1562_v3  ;;  %v1584_v1 = vadd.f32 %v1576_v46, %v1564_v7 }
 0x4ad   :  { %v1605_v10 = vrot.slane %v1597_v55, 2  ;;  %v1607_v4 = vrot.slane %v1599_v15, 2 }
 0x4ae   :  { %v1598_v22 = vmul.f32 %v1590_v21, %v1582_v24  ;;  %v1600_v27 = vmul.f32 %v1592_v5, %v1584_v1 }
 0x4af   :  { %v1614_v23 = vsel %vm1613_vm1, %v1605_v10, 0.0  ;;  %v1617_v31 = vsel %vm1613_vm1, %v1607_v4, 0.0 }
 0x4b0   :  { %v1606_v47 = vrot.slane %v1598_v22, 2  ;;  %v1608_v32 = vrot.slane %v1600_v27, 2 }
 0x4b2   :  { %v1615_v48 = vsel %vm1613_vm1, %v1606_v47, 0.0  ;;  %v1619_v53 = vsel %vm1613_vm1, %v1608_v32, 0.0 }
 0x4b3   :  { %v1616_v62 = vadd.f32 %v1615_v48, %v1614_v23 }
 0x4b5   :  { %v1618_v41 = vadd.f32 %v1617_v31, %v1616_v62 }
 0x4b7   :  { %v1620_v9 = vadd.f32 %v1619_v53, %v1618_v41 }
 0x4b9   :  { %1621 = vadd.xlane.f32.xlu1 %v1620_v9 }
 0x4ba   :  { %1765 = shalt.err (!%p1762_p9)
}
 0x4bb   :  { %1649 = dma.vmem_to_hbm [thread:$0]  %s1647_s15, 128, %s2553_s8, [#allocation3]  }
 0x4bc   :  { %s1793_s18 = smov [#allocation7]  }
 0x542   :  { %v1622_v13 = vpop.xlane.xlu1 %1621 }
 0x543   :  { %v1623_v40 = vrot.slane %v1622_v13, 4 }
 0x545   :  { %v1624_v60 = vadd.f32 %v1623_v40, %v1622_v13 }
 0x547   :  { %v1625_v50 = vrot.slane %v1624_v60, 2 }
 0x549   :  { %v1626_v30 = vadd.f32 %v1625_v50, %v1624_v60 }
 0x54b   :  { %v1627_v14 = vrot.slane %v1626_v30, 1 }
 0x54d   :  { %v1628_v54 = vadd.f32 %v1627_v14, %v1626_v30 }
 0x54f   :  { %1705 = vpush %v1628_v54 }
 0x580   :  { %s1706_s0 = spop %1705 }
 0x581   :  { %1639 = sst [smem:[#allocation7]] %s1706_s0 }
 0x582   :  { %1657 = dma.smem_to_hbm %s1793_s18, 16, %s2554_s9, [#allocation4]  }
 0x583   :  { %1784 = dma.done.wait [#allocation3], 128  }
 0x584   :  { %1785 = vsyncadd [#allocation3], 4294967168 }
 0x585   :  { %1786 = dma.done.wait [#allocation4], 16  }
 0x586   :  { %1787 = vsyncadd [#allocation4], 4294967280 }
 0x587   :  { %1664 = sfence }
 0x588   :  { %1665 = vsyncpa [#allocation3], 1 }
 0x589   :  { %1666 = vsyncpa [#allocation4], 1 }
 0x58a   :  { %1667 = vsyncpa [#allocation5], 1 }

</bundles_post_ra>
